<compile_context>
chip_gen: v7x
topology: tpu7x:2x2x1
jax: 0.10.0
libtpu: 0.0.40
codegen_flags: <defaults>
</compile_context>

<pallas_src>
import numpy as np

import jax
import jax.numpy as jnp
from jax.experimental import pallas as pl
from jax.experimental.pallas import tpu as pltpu

NSTAGE = 20
_HP = jax.lax.Precision.HIGHEST


def _round_up(n, m):
    return ((n + m - 1) // m) * m


def _sigmoid(z):
    # tanh form -> EUP slot, no divide.
    return 0.5 * (jnp.tanh(0.5 * z) + 1.0)


# ----------------------------------------------------------------------------- kernel
def net_kernel(a_ref, w1_ref, w2_ref, w3_ref, w4_ref, out_ref):
    bf16 = jnp.bfloat16

    def mm(w_ref, act):
        return jnp.dot(w_ref[...], act, preferred_element_type=jnp.float32)

    a0 = a_ref[...]                                         # (R0, B_BLK) bf16, batch on lanes

    # Stage 1: cconv1/pconv1 + max_pool + relu  (one block-diag, even/odd-stacked matmul)
    h1 = mm(w1_ref, a0)                                     # (2*C1, B) f32
    c1 = h1.shape[0] // 2
    p1 = jnp.maximum(jnp.maximum(h1[:c1], h1[c1:]), 0.0).astype(bf16)

    # Stage 2: cconv2/pconv2 + max_pool + relu
    h2 = mm(w2_ref, p1)                                     # (2*C2, B) f32
    c2 = h2.shape[0] // 2
    p2 = jnp.maximum(jnp.maximum(h2[:c2], h2[c2:]), 0.0).astype(bf16)

    # TODO(synk): F.dropout is identity here (eval mode); training parity would need pltpu PRNG.

    # Stage 3: cfc (sigmoid, rows [0,64)) / pfc (relu, rows >=64, incl. carrier row).
    h3 = mm(w3_ref, p2)                                     # (C3, B) f32
    row = jax.lax.broadcasted_iota(jnp.int32, h3.shape, 0)
    feat = jnp.where(row < 64, _sigmoid(h3), jnp.maximum(h3, 0.0)).astype(bf16)

    # Stage 4: final fc over the (already contiguous) [xfeat; yfeat; 1] slab.
    z = mm(w4_ref, feat)                                    # (1, B) f32
    out_ref[...] = _sigmoid(z)


# ----------------------------------------------------------------------------- weights
def _even_odd(big, n_pos, per_pos):
    """Split conv-as-matmul output columns by output-position parity (max_pool k=2)."""
    k = big.shape[0]
    r = big.reshape(k, n_pos, per_pos)
    even = r[:, 0::2, :].reshape(k, (n_pos // 2) * per_pos)
    odd = r[:, 1::2, :].reshape(k, (n_pos // 2) * per_pos)
    return even, odd


def _fuse_conv_stage(we_c, wo_c, b_c, we_p, wo_p, b_p, in_total):
    """Block-diag fuse content/prop even-odd Toeplitz pairs + fold biases via carrier col.

    we_*/wo_*: (in_rows, out_half) matrices (input-major orientation).
    Returns (W, C): W of shape (2*C, in_total); kernel takes relu(max(top C, bottom C)).
    """
    in_c, out_c = we_c.shape
    in_p, out_p = we_p.shape
    carrier = in_c + in_p                          # carrier row index of the INPUT slab
    C = _round_up(out_c + out_p + 1, 8)            # 8-aligned half height (pad rows -> 0)
    W = jnp.zeros((2 * C, in_total), jnp.float32)
    for h, (wc, wp) in enumerate(((we_c, we_p), (wo_c, wo_p))):
        r = h * C
        W = W.at[r:r + out_c, 0:in_c].set(wc.T)
        W = W.at[r:r + out_c, carrier].set(b_c)
        W = W.at[r + out_c:r + out_c + out_p, in_c:in_c + in_p].set(wp.T)
        W = W.at[r + out_c:r + out_c + out_p, carrier].set(b_p)
        W = W.at[r + out_c + out_p, carrier].set(1.0)   # regenerate carrier (max(1,1)=1, relu(1)=1)
    return W, C


def _prepare_weights(params, E, H):
    """Build the 4 fused, bf16, matmul-ready weight matrices."""
    H2, H4 = H // 2, H // 4
    NL2, NL4 = NSTAGE // 2, NSTAGE // 4

    # ---- content conv1: Conv2d(1, 8, (7, E), padding=(3, 0)) -> Toeplitz (rows=(stage,emb))
    s1 = np.zeros((7, NSTAGE, NSTAGE), np.float32)
    for kh in range(7):
        for so in range(NSTAGE):
            si = so + kh - 3
            if 0 <= si < NSTAGE:
                s1[kh, si, so] = 1.0
    w1 = params["w_cconv1"][:, 0]                                   # (8, 7, E)
    w1big = jnp.einsum("kis,oke->ieso", jnp.asarray(s1), w1,
                       precision=_HP).reshape(NSTAGE * E, NSTAGE * 8)
    w1e, w1o = _even_odd(w1big, NSTAGE, 8)                          # (NSTAGE*E, 80) each
    b1 = jnp.tile(params["b_cconv1"], NL2)

    # ---- content conv2: Conv1d(8, 16, 3, padding=1) on length NL2
    s2 = np.zeros((3, NL2, NL2), np.float32)
    for k in range(3):
        for so in range(NL2):
            si = so + k - 1
            if 0 <= si < NL2:
                s2[k, si, so] = 1.0
    w2big = jnp.einsum("kis,qck->icsq", jnp.asarray(s2), params["w_cconv2"],
                       precision=_HP).reshape(NL2 * 8, NL2 * 16)
    w2e, w2o = _even_odd(w2big, NL2, 16)                            # (80, 80) each
    b2 = jnp.tile(params["b_cconv2"], NL4)

    # ---- prop conv1: Conv2d(1, 8, (7, 2), padding=(3, 0)) on (H, 4)
    sh = np.zeros((7, H, H), np.float32)
    for kh in range(7):
        for ho in range(H):
            hi = ho + kh - 3
            if 0 <= hi < H:
                sh[kh, hi, ho] = 1.0
    sw = np.zeros((2, 4, 3), np.float32)
    for kw in range(2):
        for wo in range(3):
            sw[kw, wo + kw, wo] = 1.0
    wp1 = params["w_pconv1"][:, 0]                                  # (8, 7, 2)
    wp1big = jnp.einsum("aij,bkl,oab->ikjlo", jnp.asarray(sh), jnp.asarray(sw), wp1,
                        precision=_HP).reshape(H * 4, H * 24)
    wp1e, wp1o = _even_odd(wp1big, H, 24)                           # (H*4, H2*24) each
    bp1 = jnp.tile(params["b_pconv1"], H2 * 3)

    # ---- prop conv2: Conv2d(8, 16, 3, padding=(1, 0)) on (H2, 3)
    sh2 = np.zeros((3, H2, H2), np.float32)
    for kh in range(3):
        for ho in range(H2):
            hi = ho + kh - 1
            if 0 <= hi < H2:
                sh2[kh, hi, ho] = 1.0
    wp2big = jnp.einsum("aij,qcaw->iwcjq", jnp.asarray(sh2), params["w_pconv2"],
                        precision=_HP).reshape(H2 * 24, H2 * 16)
    wp2e, wp2o = _even_odd(wp2big, H2, 16)                          # (H2*24, H4*16) each
    bp2 = jnp.tile(params["b_pconv2"], H4)

    # ---- branch FCs: permute rows from PyTorch channel-major flatten to our (pos, ch) layout
    wcfc = params["w_cfc"].reshape(64, 16, NL4).transpose(0, 2, 1).reshape(64, NL4 * 16)
    wpfc = params["w_pfc"].reshape(64, 16, H4).transpose(0, 2, 1).reshape(64, H4 * 16)

    # ---- fused stage matrices
    in_c0, in_p0 = NSTAGE * E, H * 4
    R0 = in_c0 + in_p0 + 1                                          # [x; y; carrier]
    W1f, C1 = _fuse_conv_stage(w1e, w1o, b1, wp1e, wp1o, bp1, in_total=R0)
    P1c, P1p = NL2 * 8, H2 * 24
    W2f, C2 = _fuse_conv_stage(w2e, w2o, b2, wp2e, wp2o, bp2, in_total=C1)
    P2c, P2p = NL4 * 16, H4 * 16
    carrier2 = P2c + P2p

    C3 = _round_up(64 + 64 + 1, 8)
    W3f = jnp.zeros((C3, C2), jnp.float32)
    W3f = W3f.at[0:64, 0:P2c].set(wcfc)
    W3f = W3f.at[0:64, carrier2].set(params["b_cfc"])
    W3f = W3f.at[64:128, P2c:P2c + P2p].set(wpfc)
    W3f = W3f.at[64:128, carrier2].set(params["b_pfc"])
    W3f = W3f.at[128, carrier2].set(1.0)                            # carrier lands in the relu half

    W4f = jnp.zeros((1, C3), jnp.float32)
    W4f = W4f.at[0, 0:64].set(params["w_fc"][0, :64])
    W4f = W4f.at[0, 64:128].set(params["w_fc"][0, 64:])
    W4f = W4f.at[0, 128].set(params["b_fc"][0])

    bf16 = jnp.bfloat16
    dims = dict(R0=R0, C1=C1, C2=C2, C3=C3)
    return [W1f.astype(bf16), W2f.astype(bf16), W3f.astype(bf16), W4f.astype(bf16)], dims


def _choose_blocking(B, dims):
    """Pick b_blk and a VMEM limit: big lane blocks amortize per-step overhead, but keep
    >=2 blocks for B>128 (both v7x TensorCores) and fit v7x's 64 MiB physical VMEM."""
    R0, C1, C2, C3 = dims["R0"], dims["C1"], dims["C2"], dims["C3"]
    w_bytes = 2 * (2 * C1 * R0 + 2 * C2 * C1 + C3 * C2 + C3)        # bf16 fused weights
    per_col = 2 * R0 + 10 * (C1 + C2) + 6 * C3 + 4                  # rough working-set bytes / batch col
    budget = 20 << 20
    cap = max(128, ((max(budget - 2 * w_bytes, 0)) // per_col) // 128 * 128)
    if B <= 128:
        blk = 128
    else:
        blk = min(512, 128 * (-(-B // 256)))                        # >=2 blocks, <=512-wide tiles
    blk = min(blk, cap)
    est = 4 * R0 * blk + 2 * w_bytes + per_col * blk
    vmem_limit = int(min(48 << 20, max(32 << 20, 2 * est)))
    return blk, vmem_limit


# ----------------------------------------------------------------------------- wrapper
def net_forward(params, x_tok, y_sig, b_blk=None):
    B, nstage, _ = x_tok.shape
    _, H, W = y_sig.shape
    assert nstage == NSTAGE and W == 4 and H % 4 == 0
    E = params["emb"].shape[1]

    weights, dims = _prepare_weights(params, E, H)
    auto_blk, vmem_limit = _choose_blocking(B, dims)
    if b_blk is None:
        b_blk = auto_blk
    assert b_blk % 128 == 0
    num_blocks = -(-B // b_blk)
    b_pad = num_blocks * b_blk

    # nn.Embedding gather + token mean: data-dependent gather, done with XLA and emitted
    # feature-major (batch on lanes) so the kernel gets a lane-dense slab directly.
    xemb = jnp.mean(jnp.take(params["emb"], x_tok.astype(jnp.int32), axis=0), axis=2)  # (B, S, E)
    x_t = jnp.transpose(xemb, (1, 2, 0)).reshape(NSTAGE * E, B)
    y_t = jnp.transpose(y_sig.reshape(B, H * 4), (1, 0))
    ones = jnp.ones((1, B), jnp.float32)
    a0 = jnp.concatenate([x_t, y_t, ones], axis=0).astype(jnp.bfloat16)   # (R0, B)
    if b_pad != B:
        a0 = jnp.pad(a0, ((0, 0), (0, b_pad - B)))      # only the last block is ever padded

    operands = [a0] + weights
    in_specs = [pl.BlockSpec((a0.shape[0], b_blk), lambda b: (0, b))]
    in_specs += [pl.BlockSpec(w.shape, lambda b: (0, 0)) for w in weights]

    out = pl.pallas_call(
        net_kernel,
        out_shape=jax.ShapeDtypeStruct((1, b_pad), jnp.float32),
        grid=(num_blocks,),
        in_specs=in_specs,
        out_specs=pl.BlockSpec((1, b_blk), lambda b: (0, b)),       # lane-dense output store
        compiler_params=pltpu.CompilerParams(
            dimension_semantics=("parallel",),
            vmem_limit_bytes=vmem_limit),
    )(*operands)
    return out.reshape(b_pad)[:B].reshape(B, 1)


# ----------------------------------------------------------------------------- params / reference
def init_params(key, voc_size, emb_size, input_size):
    ks = jax.random.split(key, 15)

    def nrm(k, shape, scale=0.1):
        return scale * jax.random.normal(k, shape, dtype=jnp.float32)

    return dict(
        emb=nrm(ks[0], (voc_size, emb_size), 1.0),
        w_cconv1=nrm(ks[1], (8, 1, 7, emb_size)),
        b_cconv1=nrm(ks[2], (8,)),
        w_cconv2=nrm(ks[3], (16, 8, 3)),
        b_cconv2=nrm(ks[4], (16,)),
        w_cfc=nrm(ks[5], (64, NSTAGE * 16 // 4)),
        b_cfc=nrm(ks[6], (64,)),
        w_pconv1=nrm(ks[7], (8, 1, 7, 2)),
        b_pconv1=nrm(ks[8], (8,)),
        w_pconv2=nrm(ks[9], (16, 8, 3, 3)),
        b_pconv2=nrm(ks[10], (16,)),
        w_pfc=nrm(ks[11], (64, input_size // 4 * 16)),
        b_pfc=nrm(ks[12], (64,)),
        w_fc=nrm(ks[13], (1, 128)),
        b_fc=nrm(ks[14], (1,)),
    )


def net_reference(params, x_tok, y_sig):
    """Pure-JAX mirror of the PyTorch NET.forward (eval mode), used for verification."""
    B = x_tok.shape[0]
    H = y_sig.shape[1]

    xe = jnp.mean(jnp.take(params["emb"], x_tok, axis=0), axis=2)           # (B, 20, E)

    xp = jnp.pad(xe, ((0, 0), (3, 3), (0, 0)))
    w1 = params["w_cconv1"][:, 0]                                           # (8, 7, E)
    c1 = sum(jnp.einsum("bse,oe->bos", xp[:, kh:kh + NSTAGE, :], w1[:, kh, :], precision=_HP)
             for kh in range(7)) + params["b_cconv1"][None, :, None]
    p1 = jax.nn.relu(jnp.max(c1.reshape(B, 8, NSTAGE // 2, 2), axis=-1))

    w2 = params["w_cconv2"]
    p1p = jnp.pad(p1, ((0, 0), (0, 0), (1, 1)))
    c2 = sum(jnp.einsum("bcl,qc->bql", p1p[:, :, k:k + NSTAGE // 2], w2[:, :, k], precision=_HP)
             for k in range(3)) + params["b_cconv2"][None, :, None]
    p2 = jax.nn.relu(jnp.max(c2.reshape(B, 16, NSTAGE // 4, 2), axis=-1))
    xf = jax.nn.sigmoid(jnp.dot(p2.reshape(B, -1), params["w_cfc"].T, precision=_HP)
                        + params["b_cfc"])

    yp = jnp.pad(y_sig, ((0, 0), (3, 3), (0, 0)))
    wp1 = params["w_pconv1"][:, 0]                                          # (8, 7, 2)
    c1y = sum(jnp.einsum("bhw,o->bohw", yp[:, kh:kh + H, kw:kw + 3], wp1[:, kh, kw], precision=_HP)
              for kh in range(7) for kw in range(2)) + params["b_pconv1"][None, :, None, None]
    p1y = jax.nn.relu(jnp.max(c1y.reshape(B, 8, H // 2, 2, 3), axis=3))

    wp2 = params["w_pconv2"]
    p1yp = jnp.pad(p1y, ((0, 0), (0, 0), (1, 1), (0, 0)))
    c2y = sum(jnp.einsum("bchw,qcw->bqh", p1yp[:, :, kh:kh + H // 2, :], wp2[:, :, kh, :],
                         precision=_HP)
              for kh in range(3)) + params["b_pconv2"][None, :, None]
    p2y = jax.nn.relu(jnp.max(c2y.reshape(B, 16, H // 4, 2), axis=-1))
    yf = jax.nn.relu(jnp.dot(p2y.reshape(B, -1), params["w_pfc"].T, precision=_HP)
                     + params["b_pfc"])

    z = jnp.dot(jnp.concatenate([xf, yf], axis=1), params["w_fc"].T, precision=_HP) + params["b_fc"]
    return jax.nn.sigmoid(z)


if __name__ == "__main__":
    key = jax.random.PRNGKey(0)
    voc_size, emb_size, input_size = 50, 8, 16     # input_size must be divisible by 4
    B, L = 2, 6                                    # batch, tokens per stage

    kp, kx, ky = jax.random.split(key, 3)
    params = init_params(kp, voc_size, emb_size, input_size)
    x_tok = jax.random.randint(kx, (B, NSTAGE, L), 0, voc_size, dtype=jnp.int32)
    y_sig = jax.random.normal(ky, (B, input_size, 4), dtype=jnp.float32)

    out = jax.block_until_ready(net_forward(params, x_tok, y_sig))
    ref = jax.block_until_ready(net_reference(params, x_tok, y_sig))

    assert out.shape == (B, 1), out.shape
    assert bool(jnp.all(jnp.isfinite(out)))
    max_err = float(jnp.max(jnp.abs(out - ref)))
    assert max_err < 1e-2, max_err
    print("KERNEL_OK")
</pallas_src>

<mosaic_0001>
module attributes {stable_mosaic.version = 11 : i64} {
  func.func @net_kernel(%arg0: i32, %arg1: memref<225x128xbf16, #tpu.memory_space<vmem>>, %arg2: memref<560x225xbf16, #tpu.memory_space<vmem>>, %arg3: memref<304x280xbf16, #tpu.memory_space<vmem>>, %arg4: memref<136x152xbf16, #tpu.memory_space<vmem>>, %arg5: memref<1x136xbf16, #tpu.memory_space<vmem>>, %arg6: memref<1x128xf32, #tpu.memory_space<vmem>>) attributes {dimension_semantics = [#tpu.dimension_semantics<parallel>], iteration_bounds = array<i64: 1>, scalar_prefetch = 0 : i64, scratch_operands = 0 : i64, tpu.core_type = #tpu.core_type<tc>, window_params = [{transform_indices = @transform_0, window_bounds = array<i64: 225, 128>}, {pipeline_mode = #tpu.pipeline_mode<synchronous>, transform_indices = @transform_1, window_bounds = array<i64: 560, 225>}, {pipeline_mode = #tpu.pipeline_mode<synchronous>, transform_indices = @transform_2, window_bounds = array<i64: 304, 280>}, {pipeline_mode = #tpu.pipeline_mode<synchronous>, transform_indices = @transform_3, window_bounds = array<i64: 136, 152>}, {pipeline_mode = #tpu.pipeline_mode<synchronous>, transform_indices = @transform_4, window_bounds = array<i64: 1, 136>}, {transform_indices = @transform_5, window_bounds = array<i64: 1, 128>}]} {
    %c0 = arith.constant 0 : index
    %c0_0 = arith.constant 0 : index
    %0 = vector.load %arg1[%c0, %c0_0] : memref<225x128xbf16, #tpu.memory_space<vmem>>, vector<225x128xbf16>
    %c0_1 = arith.constant 0 : index
    %c0_2 = arith.constant 0 : index
    %1 = vector.load %arg2[%c0_1, %c0_2] : memref<560x225xbf16, #tpu.memory_space<vmem>>, vector<560x225xbf16>
    %cst = arith.constant dense<0.000000e+00> : vector<560x128xf32>
    %2 = tpu.matmul %1, %0, %cst {dimension_numbers = #tpu.dot_dimension_numbers<[1], [0], [0], [1], [0, 0, 1, 1], [], []>} : vector<560x225xbf16>, vector<225x128xbf16>, vector<560x128xf32> -> vector<560x128xf32>
    %3 = vector.extract_strided_slice %2 {offsets = [0, 0], sizes = [280, 128], strides = [1, 1]} : vector<560x128xf32> to vector<280x128xf32>
    %4 = vector.extract_strided_slice %2 {offsets = [280, 0], sizes = [280, 128], strides = [1, 1]} : vector<560x128xf32> to vector<280x128xf32>
    %5 = arith.maximumf %3, %4 : vector<280x128xf32>
    %cst_3 = arith.constant 0.000000e+00 : f32
    %6 = vector.broadcast %cst_3 : f32 to vector<280x128xf32>
    %7 = arith.maximumf %5, %6 : vector<280x128xf32>
    %8 = arith.truncf %7 : vector<280x128xf32> to vector<280x128xbf16>
    %c0_4 = arith.constant 0 : index
    %c0_5 = arith.constant 0 : index
    %9 = vector.load %arg3[%c0_4, %c0_5] : memref<304x280xbf16, #tpu.memory_space<vmem>>, vector<304x280xbf16>
    %cst_6 = arith.constant dense<0.000000e+00> : vector<304x128xf32>
    %10 = tpu.matmul %9, %8, %cst_6 {dimension_numbers = #tpu.dot_dimension_numbers<[1], [0], [0], [1], [0, 0, 1, 1], [], []>} : vector<304x280xbf16>, vector<280x128xbf16>, vector<304x128xf32> -> vector<304x128xf32>
    %11 = vector.extract_strided_slice %10 {offsets = [0, 0], sizes = [152, 128], strides = [1, 1]} : vector<304x128xf32> to vector<152x128xf32>
    %12 = vector.extract_strided_slice %10 {offsets = [152, 0], sizes = [152, 128], strides = [1, 1]} : vector<304x128xf32> to vector<152x128xf32>
    %13 = arith.maximumf %11, %12 : vector<152x128xf32>
    %cst_7 = arith.constant 0.000000e+00 : f32
    %14 = vector.broadcast %cst_7 : f32 to vector<152x128xf32>
    %15 = arith.maximumf %13, %14 : vector<152x128xf32>
    %16 = arith.truncf %15 : vector<152x128xf32> to vector<152x128xbf16>
    %c0_8 = arith.constant 0 : index
    %c0_9 = arith.constant 0 : index
    %17 = vector.load %arg4[%c0_8, %c0_9] : memref<136x152xbf16, #tpu.memory_space<vmem>>, vector<136x152xbf16>
    %cst_10 = arith.constant dense<0.000000e+00> : vector<136x128xf32>
    %18 = tpu.matmul %17, %16, %cst_10 {dimension_numbers = #tpu.dot_dimension_numbers<[1], [0], [0], [1], [0, 0, 1, 1], [], []>} : vector<136x152xbf16>, vector<152x128xbf16>, vector<136x128xf32> -> vector<136x128xf32>
    %19 = tpu.iota {dimensions = array<i32: 0>} : vector<136x128xi32>
    %c64_i32 = arith.constant 64 : i32
    %20 = vector.broadcast %c64_i32 : i32 to vector<136x128xi32>
    %21 = arith.cmpi slt, %19, %20 : vector<136x128xi32>
    %cst_11 = arith.constant 5.000000e-01 : f32
    %22 = vector.broadcast %cst_11 : f32 to vector<136x128xf32>
    %23 = arith.mulf %22, %18 : vector<136x128xf32>
    %24 = math.tanh %23 : vector<136x128xf32>
    %cst_12 = arith.constant 1.000000e+00 : f32
    %25 = vector.broadcast %cst_12 : f32 to vector<136x128xf32>
    %26 = arith.addf %24, %25 : vector<136x128xf32>
    %cst_13 = arith.constant 5.000000e-01 : f32
    %27 = vector.broadcast %cst_13 : f32 to vector<136x128xf32>
    %28 = arith.mulf %27, %26 : vector<136x128xf32>
    %cst_14 = arith.constant 0.000000e+00 : f32
    %29 = vector.broadcast %cst_14 : f32 to vector<136x128xf32>
    %30 = arith.maximumf %18, %29 : vector<136x128xf32>
    %31 = arith.select %21, %28, %30 : vector<136x128xi1>, vector<136x128xf32>
    %32 = arith.truncf %31 : vector<136x128xf32> to vector<136x128xbf16>
    %c0_15 = arith.constant 0 : index
    %c0_16 = arith.constant 0 : index
    %33 = vector.load %arg5[%c0_15, %c0_16] : memref<1x136xbf16, #tpu.memory_space<vmem>>, vector<1x136xbf16>
    %cst_17 = arith.constant dense<0.000000e+00> : vector<1x128xf32>
    %34 = tpu.matmul %33, %32, %cst_17 {dimension_numbers = #tpu.dot_dimension_numbers<[1], [0], [0], [1], [0, 0, 1, 1], [], []>} : vector<1x136xbf16>, vector<136x128xbf16>, vector<1x128xf32> -> vector<1x128xf32>
    %cst_18 = arith.constant 5.000000e-01 : f32
    %35 = vector.broadcast %cst_18 : f32 to vector<1x128xf32>
    %36 = arith.mulf %35, %34 : vector<1x128xf32>
    %37 = math.tanh %36 : vector<1x128xf32>
    %cst_19 = arith.constant 1.000000e+00 : f32
    %38 = vector.broadcast %cst_19 : f32 to vector<1x128xf32>
    %39 = arith.addf %37, %38 : vector<1x128xf32>
    %cst_20 = arith.constant 5.000000e-01 : f32
    %40 = vector.broadcast %cst_20 : f32 to vector<1x128xf32>
    %41 = arith.mulf %40, %39 : vector<1x128xf32>
    %c0_21 = arith.constant 0 : index
    %c0_22 = arith.constant 0 : index
    %42 = vector.load %arg6[%c0_21, %c0_22] : memref<1x128xf32, #tpu.memory_space<vmem>>, vector<1x128xf32>
    tpu.vector_store %arg6[%c0_21, %c0_22], %41 {strides = array<i32>} : memref<1x128xf32, #tpu.memory_space<vmem>>, vector<1x128xf32>,
    return
  }
  func.func @transform_0(%arg0: i32) -> (i32, i32) {
    %c0_i32 = arith.constant 0 : i32
    %c0_i32_0 = arith.constant 0 : i32
    return %c0_i32, %arg0 : i32, i32
  }
  func.func @transform_1(%arg0: i32) -> (i32, i32) {
    %c0_i32 = arith.constant 0 : i32
    %c0_i32_0 = arith.constant 0 : i32
    %c0_i32_1 = arith.constant 0 : i32
    return %c0_i32, %c0_i32_0 : i32, i32
  }
  func.func @transform_2(%arg0: i32) -> (i32, i32) {
    %c0_i32 = arith.constant 0 : i32
    %c0_i32_0 = arith.constant 0 : i32
    %c0_i32_1 = arith.constant 0 : i32
    return %c0_i32, %c0_i32_0 : i32, i32
  }
  func.func @transform_3(%arg0: i32) -> (i32, i32) {
    %c0_i32 = arith.constant 0 : i32
    %c0_i32_0 = arith.constant 0 : i32
    %c0_i32_1 = arith.constant 0 : i32
    return %c0_i32, %c0_i32_0 : i32, i32
  }
  func.func @transform_4(%arg0: i32) -> (i32, i32) {
    %c0_i32 = arith.constant 0 : i32
    %c0_i32_0 = arith.constant 0 : i32
    %c0_i32_1 = arith.constant 0 : i32
    return %c0_i32, %c0_i32_0 : i32, i32
  }
  func.func @transform_5(%arg0: i32) -> (i32, i32) {
    %c0_i32 = arith.constant 0 : i32
    %c0_i32_0 = arith.constant 0 : i32
    return %c0_i32, %arg0 : i32, i32
  }
}

</mosaic_0001>

<bundles_post_ra>
// kernel: tpu_custom_call.1
= control target key start
LH: loop header
LB: loop body
LE: loop exit
PB: predicated region body
PF: predicated region fallthrough
CT: control target
= control target key end

     0   :  { %v3014_v1 = vmov 0   ;;  %vm523_vm0 = vcmask 793600   ;;  %vm629_vm1 = vcmask 1040384   ;;  %s3854_s0 = inlined_call_operand.vmem [shape: bf16[225,128], index: 0, kind: input, shape index: {}]   ;;  %s3855_s1 = inlined_call_operand.vmem [shape: bf16[560,225], index: 1, kind: input, shape index: {}]   ;;  %s3856_s2 = inlined_call_operand.vmem [shape: bf16[304,280], index: 2, kind: input, shape index: {}]   ;;  %s3857_s3 = inlined_call_operand.vmem [shape: bf16[136,152], index: 3, kind: input, shape index: {}]   ;;  %s3858_s4 = inlined_call_operand.vmem [shape: bf16[1,136], index: 4, kind: input, shape index: {}]   ;;  %s3859_s5 = inlined_call_operand.hbm [shape: f32[1,128], index: 5, kind: output, shape index: {}]  }
   0x1   :  { %v2750_v0 = vld [vmem:[%s3854_s0] sm:$0xff]   ;;  %635 = vmatprep.subr.bf16.mxu0 %v3014_v1  ;;  %1459 = vmatprep.subr.bf16.mxu1 %v3014_v1  ;;  %v2751_v2 = vld [vmem:[%s3854_s0 + $0x8] sm:$0xff]   ;;  %v2752_v3 = vld [vmem:[%s3854_s0 + $0x10] sm:$0xff]   ;;  %v631_v17 = vsel %vm629_vm1, 65535, %v3014_v1 }
   0x2   :  { %636 = vmatpush1.bf16.msra.mxu0 %v2750_v0  ;;  %v2753_v4 = vld [vmem:[%s3854_s0 + $0x18] sm:$0xff]   ;;  %v2754_v5 = vld [vmem:[%s3854_s0 + $0x20] sm:$0xff]   ;;  %v2755_v7 = vld [vmem:[%s3854_s0 + $0x28] sm:$0xff]  }
   0x3   :  { %637 = vmatprep.subr.bf16.mxu0 %v3014_v1  ;;  %v2767_v6 = vld [vmem:[%s3855_s1 + $0x4] ss:$8 sps:$4 sm:$0xff]   ;;  %v2756_v8 = vld [vmem:[%s3854_s0 + $0x30] sm:$0xff]   ;;  %v2757_v9 = vld [vmem:[%s3854_s0 + $0x38] sm:$0xff]  }
   0x4   :  { %2428 = vmatprep.mubr.msk.bf16.mxu0 %vm523_vm0, %v2767_v6  ;;  %v2758_v10 = vld [vmem:[%s3854_s0 + $0x40] sm:$0xff]   ;;  %v2759_v11 = vld [vmem:[%s3854_s0 + $0x48] sm:$0xff]   ;;  %v2760_v12 = vld [vmem:[%s3854_s0 + $0x50] sm:$0xff]  }
   0x5   :  { %v2761_v13 = vld [vmem:[%s3854_s0 + $0x58] sm:$0xff]   ;;  %v2762_v14 = vld [vmem:[%s3854_s0 + $0x60] sm:$0xff]   ;;  %v2763_v15 = vld [vmem:[%s3854_s0 + $0x68] sm:$0xff]  }
   0x6   :  { %638 = vmatpush1.bf16.msra.mxu0 %v2751_v2  ;;  %v2764_v16 = vld [vmem:[%s3854_s0 + $0x70] ss:$0 sps:$4 sm:$0x11]   ;;  %v2765_v19 = vld [vmem:[%s3855_s1] ss:$8 sps:$4 sm:$0xff]  }
   0x7   :  { %639 = vmatprep.subr.bf16.mxu0 %v3014_v1  ;;  %v633_v18 = vand.u32 %v2764_v16, %v631_v17  ;;  %v2768_v20 = vld [vmem:[%s3855_s1 + $0x14] ss:$8 sps:$4 sm:$0xff]   ;;  %v2770_v21 = vld [vmem:[%s3855_s1 + $0x10] ss:$8 sps:$4 sm:$0xff]   ;;  %v2771_v22 = vld [vmem:[%s3855_s1 + $0x24] ss:$8 sps:$4 sm:$0xff]  }
   0x8   :  { %v2773_v23 = vld [vmem:[%s3855_s1 + $0x20] ss:$8 sps:$4 sm:$0xff]   ;;  %v2774_v24 = vld [vmem:[%s3855_s1 + $0x34] ss:$8 sps:$4 sm:$0xff]   ;;  %v2776_v25 = vld [vmem:[%s3855_s1 + $0x30] ss:$8 sps:$4 sm:$0xff]  }
   0x9   :  { %v2777_v26 = vld [vmem:[%s3855_s1 + $0x44] ss:$8 sps:$4 sm:$0xff]  }
   0xa   :  { %640 = vmatpush1.bf16.msra.mxu0 %v2752_v3 }
   0xb   :  { %641 = vmatprep.subr.bf16.mxu0 %v3014_v1 }
   0xe   :  { %642 = vmatpush1.bf16.msra.mxu0 %v2753_v4 }
   0xf   :  { %643 = vmatprep.subr.bf16.mxu0 %v3014_v1 }
  0x12   :  { %644 = vmatpush1.bf16.msra.mxu0 %v2754_v5 }
  0x13   :  { %645 = vmatprep.subr.bf16.mxu0 %v3014_v1 }
  0x16   :  { %646 = vmatpush1.bf16.msra.mxu0 %v2755_v7 }
  0x17   :  { %647 = vmatprep.subr.bf16.mxu0 %v3014_v1 }
  0x1a   :  { %648 = vmatpush1.bf16.msra.mxu0 %v2756_v8 }
  0x1b   :  { %649 = vmatprep.subr.bf16.mxu0 %v3014_v1 }
  0x1e   :  { %650 = vmatpush1.bf16.msra.mxu0 %v2757_v9 }
  0x1f   :  { %651 = vmatprep.subr.bf16.mxu0 %v3014_v1 }
  0x22   :  { %652 = vmatpush1.bf16.msra.mxu0 %v2758_v10 }
  0x23   :  { %653 = vmatprep.subr.bf16.mxu0 %v3014_v1 }
  0x26   :  { %654 = vmatpush1.bf16.msra.mxu0 %v2759_v11 }
  0x27   :  { %655 = vmatprep.subr.bf16.mxu0 %v3014_v1 }
  0x2a   :  { %656 = vmatpush1.bf16.msra.mxu0 %v2760_v12 }
  0x2b   :  { %657 = vmatprep.subr.bf16.mxu0 %v3014_v1 }
  0x2e   :  { %658 = vmatpush1.bf16.msra.mxu0 %v2761_v13 }
  0x2f   :  { %659 = vmatprep.subr.bf16.mxu0 %v3014_v1 }
  0x32   :  { %660 = vmatpush1.bf16.msra.mxu0 %v2762_v14 }
  0x33   :  { %661 = vmatprep.subr.bf16.mxu0 %v3014_v1 }
  0x36   :  { %662 = vmatpush1.bf16.msra.mxu0 %v2763_v15 }
  0x37   :  { %663 = vmatprep.subr.bf16.mxu0 %v3014_v1 }
  0x3a   :  { %664 = vmatpush1.bf16.msra.mxu0 %v633_v18 }
  0x3b   :  { %2002 = vmatprep.subr.bf16.mxu0 %v3014_v1 }
  0x3d   :  { %668 = vmatmul.mubr.bf16.vlgmr.msra.gmra.mrb[0].mxu0 %v2765_v19 }
  0x3e   :  { %2429 = vmatprep.mubr.msk.bf16.mxu0 %vm523_vm0, %v2768_v20 }
  0x45   :  { %676 = vmatmul.mubr.bf16.gmra.mrb[4].mxu0 %v2770_v21 }
  0x46   :  { %2430 = vmatprep.mubr.msk.bf16.mxu0 %vm523_vm0, %v2771_v22 }
  0x4d   :  { %684 = vmatmul.mubr.bf16.gmra.mrb[8].mxu0 %v2773_v23 }
  0x4e   :  { %2431 = vmatprep.mubr.msk.bf16.mxu0 %vm523_vm0, %v2774_v24 }
  0x4f   :  { %10 = vsyncpa [#allocation3], 0  ;;  %v2779_v27 = vld [vmem:[%s3855_s1 + $0x40] ss:$8 sps:$4 sm:$0xff]   ;;  %v2780_v28 = vld [vmem:[%s3855_s1 + $0x54] ss:$8 sps:$4 sm:$0xff]  }
  0x50   :  { %v2782_v29 = vld [vmem:[%s3855_s1 + $0x50] ss:$8 sps:$4 sm:$0xff]   ;;  %v2783_v30 = vld [vmem:[%s3855_s1 + $0x64] ss:$8 sps:$4 sm:$0xff]   ;;  %v2785_v31 = vld [vmem:[%s3855_s1 + $0x60] ss:$8 sps:$4 sm:$0xff]  }
  0x51   :  { %v2786_v32 = vld [vmem:[%s3855_s1 + $0x74] ss:$8 sps:$4 sm:$0xff]   ;;  %v2788_v33 = vld [vmem:[%s3855_s1 + $0x70] ss:$8 sps:$4 sm:$0xff]   ;;  %v2789_v34 = vld [vmem:[%s3855_s1 + $0x84] ss:$8 sps:$4 sm:$0xff]  }
  0x52   :  { %v2791_v35 = vld [vmem:[%s3855_s1 + $0x80] ss:$8 sps:$4 sm:$0xff]   ;;  %v2792_v36 = vld [vmem:[%s3855_s1 + $0x94] ss:$8 sps:$4 sm:$0xff]   ;;  %v2794_v37 = vld [vmem:[%s3855_s1 + $0x90] ss:$8 sps:$4 sm:$0xff]  }
  0x53   :  { %v2795_v38 = vld [vmem:[%s3855_s1 + $0xa4] ss:$8 sps:$4 sm:$0xff]   ;;  %v2797_v39 = vld [vmem:[%s3855_s1 + $0xa0] ss:$8 sps:$4 sm:$0xff]   ;;  %v2798_v40 = vld [vmem:[%s3855_s1 + $0xb4] ss:$8 sps:$4 sm:$0xff]  }
  0x54   :  { %v2800_v41 = vld [vmem:[%s3855_s1 + $0xb0] ss:$8 sps:$4 sm:$0xff]   ;;  %v2801_v42 = vld [vmem:[%s3855_s1 + $0xc4] ss:$8 sps:$4 sm:$0xff]   ;;  %v2803_v43 = vld [vmem:[%s3855_s1 + $0xc0] ss:$8 sps:$4 sm:$0xff]  }
  0x55   :  { %692 = vmatmul.mubr.bf16.gmra.mrb[12].mxu0 %v2776_v25  ;;  %v2804_v44 = vld [vmem:[%s3855_s1 + $0xd4] ss:$8 sps:$4 sm:$0xff]   ;;  %v2806_v45 = vld [vmem:[%s3855_s1 + $0xd0] ss:$8 sps:$4 sm:$0xff]   ;;  %v2807_v46 = vld [vmem:[%s3855_s1 + $0xe4] ss:$8 sps:$4 sm:$0xff]  }
  0x56   :  { %2432 = vmatprep.mubr.msk.bf16.mxu0 %vm523_vm0, %v2777_v26  ;;  %v2809_v47 = vld [vmem:[%s3855_s1 + $0xe0] ss:$8 sps:$4 sm:$0xff]   ;;  %v2810_v48 = vld [vmem:[%s3855_s1 + $0xf4] ss:$8 sps:$4 sm:$0xff]   ;;  %v2812_v49 = vld [vmem:[%s3855_s1 + $0xf0] ss:$8 sps:$4 sm:$0xff]  }
  0x57   :  { %v2813_v50 = vld [vmem:[%s3855_s1 + $0x104] ss:$8 sps:$4 sm:$0xff]   ;;  %v2815_v51 = vld [vmem:[%s3855_s1 + $0x100] ss:$8 sps:$4 sm:$0xff]   ;;  %v2816_v52 = vld [vmem:[%s3855_s1 + $0x114] ss:$8 sps:$4 sm:$0xff]  }
  0x58   :  { %v2818_v53 = vld [vmem:[%s3855_s1 + $0x110] ss:$8 sps:$4 sm:$0xff]   ;;  %v2819_v54 = vld [vmem:[%s3855_s1 + $0x124] ss:$8 sps:$4 sm:$0xff]   ;;  %v2821_v55 = vld [vmem:[%s3855_s1 + $0x120] ss:$8 sps:$4 sm:$0xff]  }
  0x59   :  { %v2822_v56 = vld [vmem:[%s3855_s1 + $0x134] ss:$8 sps:$4 sm:$0xff]   ;;  %v2824_v57 = vld [vmem:[%s3855_s1 + $0x130] ss:$8 sps:$4 sm:$0xff]   ;;  %v2825_v58 = vld [vmem:[%s3855_s1 + $0x144] ss:$8 sps:$4 sm:$0xff]  }
  0x5a   :  { %v2827_v59 = vld [vmem:[%s3855_s1 + $0x140] ss:$8 sps:$4 sm:$0xff]   ;;  %v2828_v60 = vld [vmem:[%s3855_s1 + $0x154] ss:$8 sps:$4 sm:$0xff]   ;;  %v2830_v61 = vld [vmem:[%s3855_s1 + $0x150] ss:$8 sps:$4 sm:$0xff]  }
  0x5b   :  { %v2831_v62 = vld [vmem:[%s3855_s1 + $0x164] ss:$8 sps:$4 sm:$0xff]   ;;  %v2833_v63 = vld [vmem:[%s3855_s1 + $0x160] ss:$8 sps:$4 sm:$0xff]   ;;  %v2834_v0 = vld [vmem:[%s3855_s1 + $0x174] ss:$8 sps:$4 sm:$0xff]  }
  0x5c   :  { %v2836_v2 = vld [vmem:[%s3855_s1 + $0x170] ss:$8 sps:$4 sm:$0xff]   ;;  %v2837_v3 = vld [vmem:[%s3855_s1 + $0x184] ss:$8 sps:$4 sm:$0xff]   ;;  %v2839_v4 = vld [vmem:[%s3855_s1 + $0x180] ss:$8 sps:$4 sm:$0xff]  }
  0x5d   :  { %700 = vmatmul.mubr.bf16.gmra.mrb[16].mxu0 %v2779_v27  ;;  %v2840_v5 = vld [vmem:[%s3855_s1 + $0x194] ss:$8 sps:$4 sm:$0xff]   ;;  %v2842_v6 = vld [vmem:[%s3855_s1 + $0x190] ss:$8 sps:$4 sm:$0xff]   ;;  %v2843_v7 = vld [vmem:[%s3855_s1 + $0x1a4] ss:$8 sps:$4 sm:$0xff]  }
  0x5e   :  { %2433 = vmatprep.mubr.msk.bf16.mxu0 %vm523_vm0, %v2780_v28  ;;  %v2845_v8 = vld [vmem:[%s3855_s1 + $0x1a0] ss:$8 sps:$4 sm:$0xff]   ;;  %v2846_v9 = vld [vmem:[%s3855_s1 + $0x1b4] ss:$8 sps:$4 sm:$0xff]   ;;  %v2848_v12 = vld [vmem:[%s3855_s1 + $0x1b0] ss:$8 sps:$4 sm:$0xff]  }
  0x5f   :  { %v2849_v14 = vld [vmem:[%s3855_s1 + $0x1c4] ss:$8 sps:$4 sm:$0xff]   ;;  %v2851_v18 = vld [vmem:[%s3855_s1 + $0x1c0] ss:$8 sps:$4 sm:$0xff]   ;;  %v2852_v20 = vld [vmem:[%s3855_s1 + $0x1d4] ss:$8 sps:$4 sm:$0xff]  }
  0x60   :  { %v2854_v24 = vld [vmem:[%s3855_s1 + $0x1d0] ss:$8 sps:$4 sm:$0xff]   ;;  %v2855_v26 = vld [vmem:[%s3855_s1 + $0x1e4] ss:$8 sps:$4 sm:$0xff]   ;;  %vm1455_vm2 = vcmask 1043456   ;;  %vm3016_vm3 = vmmov 0  }
  0x61   :  { %vm1397_vm4 = vcmask 195584   ;;  %vm2277_vm5 = vcmask 64512  }
  0x65   :  { %708 = vmatmul.mubr.bf16.gmra.mrb[20].mxu0 %v2782_v29 }
  0x66   :  { %2434 = vmatprep.mubr.msk.bf16.mxu0 %vm523_vm0, %v2783_v30  ;;  %v2857_v30 = vld [vmem:[%s3855_s1 + $0x1e0] ss:$8 sps:$4 sm:$0xff]  }
  0x6d   :  { %716 = vmatmul.mubr.bf16.gmra.mrb[24].mxu0 %v2785_v31 }
  0x6e   :  { %2435 = vmatprep.mubr.msk.bf16.mxu0 %vm523_vm0, %v2786_v32  ;;  %v2858_v32 = vld [vmem:[%s3855_s1 + $0x1f4] ss:$8 sps:$4 sm:$0xff]  }
  0x75   :  { %724 = vmatmul.mubr.bf16.gmra.mrb[28].mxu0 %v2788_v33 }
  0x76   :  { %2436 = vmatprep.mubr.msk.bf16.mxu0 %vm523_vm0, %v2789_v34 }
  0x7d   :  { %732 = vmatmul.mubr.bf16.gmra.mrb[32].mxu0 %v2791_v35 }
  0x7e   :  { %2437 = vmatprep.mubr.msk.bf16.mxu0 %vm523_vm0, %v2792_v36  ;;  %v2860_v36 = vld [vmem:[%s3855_s1 + $0x1f0] ss:$8 sps:$4 sm:$0xff]  }
  0x85   :  { %740 = vmatmul.mubr.bf16.gmra.mrb[36].mxu0 %v2794_v37 }
  0x86   :  { %2438 = vmatprep.mubr.msk.bf16.mxu0 %vm523_vm0, %v2795_v38  ;;  %v2861_v38 = vld [vmem:[%s3855_s1 + $0x204] ss:$8 sps:$4 sm:$0xff]  }
  0x8d   :  { %748 = vmatmul.mubr.bf16.gmra.mrb[40].mxu0 %v2797_v39 }
  0x8e   :  { %2439 = vmatprep.mubr.msk.bf16.mxu0 %vm523_vm0, %v2798_v40 }
  0x95   :  { %756 = vmatmul.mubr.bf16.gmra.mrb[44].mxu0 %v2800_v41 }
  0x96   :  { %2440 = vmatprep.mubr.msk.bf16.mxu0 %vm523_vm0, %v2801_v42  ;;  %v2863_v42 = vld [vmem:[%s3855_s1 + $0x200] ss:$8 sps:$4 sm:$0xff]  }
  0x9d   :  { %764 = vmatmul.mubr.bf16.gmra.mrb[48].mxu0 %v2803_v43 }
  0x9e   :  { %2441 = vmatprep.mubr.msk.bf16.mxu0 %vm523_vm0, %v2804_v44  ;;  %v2864_v44 = vld [vmem:[%s3855_s1 + $0x214] ss:$8 sps:$4 sm:$0xff]  }
  0xa5   :  { %772 = vmatmul.mubr.bf16.gmra.mrb[52].mxu0 %v2806_v45 }
  0xa6   :  { %2442 = vmatprep.mubr.msk.bf16.mxu0 %vm523_vm0, %v2807_v46 }
  0xad   :  { %780 = vmatmul.mubr.bf16.gmra.mrb[56].mxu0 %v2809_v47 }
  0xae   :  { %2443 = vmatprep.mubr.msk.bf16.mxu0 %vm523_vm0, %v2810_v48  ;;  %v2866_v48 = vld [vmem:[%s3855_s1 + $0x210] ss:$8 sps:$4 sm:$0xff]  }
  0xb5   :  { %788 = vmatmul.mubr.bf16.gmra.mrb[60].mxu0 %v2812_v49 }
  0xb6   :  { %2444 = vmatprep.mubr.msk.bf16.mxu0 %vm523_vm0, %v2813_v50  ;;  %v2867_v50 = vld [vmem:[%s3855_s1 + $0x224] ss:$8 sps:$4 sm:$0xff]  }
  0xbd   :  { %796 = vmatmul.mubr.bf16.gmra.mrb[64].mxu0 %v2815_v51 }
  0xbe   :  { %2445 = vmatprep.mubr.msk.bf16.mxu0 %vm523_vm0, %v2816_v52 }
  0xc5   :  { %804 = vmatmul.mubr.bf16.gmra.mrb[68].mxu0 %v2818_v53 }
  0xc6   :  { %2446 = vmatprep.mubr.msk.bf16.mxu0 %vm523_vm0, %v2819_v54  ;;  %v2869_v54 = vld [vmem:[%s3855_s1 + $0x220] ss:$8 sps:$4 sm:$0xff]  }
  0xcd   :  { %812 = vmatmul.mubr.bf16.gmra.mrb[72].mxu0 %v2821_v55 }
  0xce   :  { %2447 = vmatprep.mubr.msk.bf16.mxu0 %vm523_vm0, %v2822_v56 }
  0xd5   :  { %820 = vmatmul.mubr.bf16.gmra.mrb[76].mxu0 %v2824_v57 }
  0xd6   :  { %2448 = vmatprep.mubr.msk.bf16.mxu0 %vm523_vm0, %v2825_v58 }
  0xdd   :  { %828 = vmatmul.mubr.bf16.gmra.mrb[80].mxu0 %v2827_v59 }
  0xde   :  { %2449 = vmatprep.mubr.msk.bf16.mxu0 %vm523_vm0, %v2828_v60 }
  0xe5   :  { %836 = vmatmul.mubr.bf16.gmra.mrb[84].mxu0 %v2830_v61 }
  0xe6   :  { %2450 = vmatprep.mubr.msk.bf16.mxu0 %vm523_vm0, %v2831_v62 }
  0xed   :  { %844 = vmatmul.mubr.bf16.gmra.mrb[88].mxu0 %v2833_v63 }
  0xee   :  { %2451 = vmatprep.mubr.msk.bf16.mxu0 %vm523_vm0, %v2834_v0 }
  0xf5   :  { %852 = vmatmul.mubr.bf16.gmra.mrb[92].mxu0 %v2836_v2 }
  0xf6   :  { %2452 = vmatprep.mubr.msk.bf16.mxu0 %vm523_vm0, %v2837_v3 }
  0xfd   :  { %860 = vmatmul.mubr.bf16.gmra.mrb[96].mxu0 %v2839_v4 }
  0xfe   :  { %2453 = vmatprep.mubr.msk.bf16.mxu0 %vm523_vm0, %v2840_v5 }
 0x105   :  { %868 = vmatmul.mubr.bf16.gmra.mrb[100].mxu0 %v2842_v6 }
 0x106   :  { %2454 = vmatprep.mubr.msk.bf16.mxu0 %vm523_vm0, %v2843_v7 }
 0x10d   :  { %876 = vmatmul.mubr.bf16.gmra.mrb[104].mxu0 %v2845_v8 }
 0x10e   :  { %2455 = vmatprep.mubr.msk.bf16.mxu0 %vm523_vm0, %v2846_v9 }
 0x110   :  { %v3305_v10 = vpop.f32.mrb[0].mxu0 }
 0x111   :  { %v671_v11 = vpop.f32.mrb[1].mxu0 }
 0x112   :  { %v3310_v13 = vpop.f32.mrb[2].mxu0 }
 0x113   :  { %v674_v15 = vpop.f32.mrb[3].mxu0 }
 0x115   :  { %884 = vmatmul.mubr.bf16.gmra.mrb[108].mxu0 %v2848_v12 }
 0x116   :  { %2456 = vmatprep.mubr.msk.bf16.mxu0 %vm523_vm0, %v2849_v14 }
 0x118   :  { %v3316_v16 = vpop.f32.mrb[4].mxu0 }
 0x119   :  { %v679_v17 = vpop.f32.mrb[5].mxu0 }
 0x11a   :  { %v3321_v19 = vpop.f32.mrb[6].mxu0 }
 0x11b   :  { %v682_v21 = vpop.f32.mrb[7].mxu0 }
 0x11d   :  { %892 = vmatmul.mubr.bf16.gmra.mrb[112].mxu0 %v2851_v18 }
 0x11e   :  { %2457 = vmatprep.mubr.msk.bf16.mxu0 %vm523_vm0, %v2852_v20 }
 0x120   :  { %v3327_v22 = vpop.f32.mrb[8].mxu0 }
 0x121   :  { %v687_v23 = vpop.f32.mrb[9].mxu0 }
 0x122   :  { %v3332_v25 = vpop.f32.mrb[10].mxu0 }
 0x123   :  { %v690_v27 = vpop.f32.mrb[11].mxu0 }
 0x125   :  { %900 = vmatmul.mubr.bf16.gmra.mrb[116].mxu0 %v2854_v24 }
 0x126   :  { %2458 = vmatprep.mubr.msk.bf16.mxu0 %vm523_vm0, %v2855_v26 }
 0x128   :  { %v3338_v28 = vpop.f32.mrb[12].mxu0 }
 0x129   :  { %v695_v29 = vpop.f32.mrb[13].mxu0 }
 0x12a   :  { %v3343_v31 = vpop.f32.mrb[14].mxu0 }
 0x12b   :  { %v698_v33 = vpop.f32.mrb[15].mxu0 }
 0x12d   :  { %908 = vmatmul.mubr.bf16.gmra.mrb[120].mxu0 %v2857_v30 }
 0x12e   :  { %2459 = vmatprep.mubr.msk.bf16.mxu0 %vm523_vm0, %v2858_v32 }
 0x130   :  { %v3349_v34 = vpop.f32.mrb[16].mxu0 }
 0x131   :  { %v703_v35 = vpop.f32.mrb[17].mxu0 }
 0x132   :  { %v3354_v37 = vpop.f32.mrb[18].mxu0 }
 0x133   :  { %v706_v39 = vpop.f32.mrb[19].mxu0 }
 0x135   :  { %916 = vmatmul.mubr.bf16.gmra.mrb[124].mxu0 %v2860_v36 }
 0x136   :  { %2460 = vmatprep.mubr.msk.bf16.mxu0 %vm523_vm0, %v2861_v38 }
 0x138   :  { %v3360_v40 = vpop.f32.mrb[20].mxu0 }
 0x139   :  { %v711_v41 = vpop.f32.mrb[21].mxu0 }
 0x13a   :  { %v3365_v43 = vpop.f32.mrb[22].mxu0 }
 0x13b   :  { %v714_v45 = vpop.f32.mrb[23].mxu0 }
 0x13d   :  { %924 = vmatmul.mubr.bf16.gmra.mrb[128].mxu0 %v2863_v42 }
 0x13e   :  { %2461 = vmatprep.mubr.msk.bf16.mxu0 %vm523_vm0, %v2864_v44 }
 0x140   :  { %v3371_v46 = vpop.f32.mrb[24].mxu0 }
 0x141   :  { %v719_v47 = vpop.f32.mrb[25].mxu0 }
 0x142   :  { %v3376_v49 = vpop.f32.mrb[26].mxu0 }
 0x143   :  { %v722_v51 = vpop.f32.mrb[27].mxu0 }
 0x145   :  { %932 = vmatmul.mubr.bf16.gmra.mrb[132].mxu0 %v2866_v48  ;;  %v2872_v48 = vld [vmem:[%s3856_s2 + $0x4] ss:$12 sps:$4 sm:$0xff]  }
 0x146   :  { %2462 = vmatprep.mubr.msk.bf16.mxu0 %vm523_vm0, %v2867_v50  ;;  %1491 = vmatprep.mubr.bf16.mxu1 %v2872_v48 }
 0x148   :  { %v3382_v52 = vpop.f32.mrb[28].mxu0 }
 0x149   :  { %v727_v53 = vpop.f32.mrb[29].mxu0 }
 0x14a   :  { %v3387_v55 = vpop.f32.mrb[30].mxu0 }
 0x14b   :  { %v730_v56 = vpop.f32.mrb[31].mxu0 }
 0x14d   :  { %940 = vmatmul.mubr.bf16.gmra.mrb[136].mxu0 %v2869_v54 }
 0x150   :  { %v3389_v57 = vpop.f32.mrb[32].mxu0 }
 0x151   :  { %v735_v58 = vpop.f32.mrb[33].mxu0 }
 0x152   :  { %v3391_v59 = vpop.f32.mrb[34].mxu0 }
 0x153   :  { %v738_v60 = vpop.f32.mrb[35].mxu0 }
 0x158   :  { %v3393_v61 = vpop.f32.mrb[36].mxu0 }
 0x159   :  { %v743_v62 = vpop.f32.mrb[37].mxu0 }
 0x15a   :  { %v3395_v63 = vpop.f32.mrb[38].mxu0 }
 0x15b   :  { %v746_v0 = vpop.f32.mrb[39].mxu0 }
 0x160   :  { %v3397_v2 = vpop.f32.mrb[40].mxu0 }
 0x161   :  { %v751_v3 = vpop.f32.mrb[41].mxu0 }
 0x162   :  { %v3399_v4 = vpop.f32.mrb[42].mxu0 }
 0x163   :  { %v754_v5 = vpop.f32.mrb[43].mxu0 }
 0x168   :  { %v3401_v6 = vpop.f32.mrb[44].mxu0 }
 0x169   :  { %v759_v7 = vpop.f32.mrb[45].mxu0 }
 0x16a   :  { %v3403_v8 = vpop.f32.mrb[46].mxu0 }
 0x16b   :  { %v762_v9 = vpop.f32.mrb[47].mxu0 }
 0x170   :  { %v3405_v11 = vpop.f32.mrb[48].mxu0 }
 0x171   :  { %v767_v12 = vpop.f32.mrb[49].mxu0 }
 0x172   :  { %v3407_v14 = vpop.f32.mrb[50].mxu0 }
 0x173   :  { %v770_v15 = vpop.f32.mrb[51].mxu0 }
 0x178   :  { %v3409_v17 = vpop.f32.mrb[52].mxu0 }
 0x179   :  { %v775_v18 = vpop.f32.mrb[53].mxu0 }
 0x17a   :  { %v3411_v20 = vpop.f32.mrb[54].mxu0 }
 0x17b   :  { %v778_v21 = vpop.f32.mrb[55].mxu0 }
 0x180   :  { %v3413_v23 = vpop.f32.mrb[56].mxu0 }
 0x181   :  { %v783_v24 = vpop.f32.mrb[57].mxu0 }
 0x182   :  { %v3415_v26 = vpop.f32.mrb[58].mxu0 }
 0x183   :  { %v786_v27 = vpop.f32.mrb[59].mxu0 }
 0x188   :  { %v3417_v29 = vpop.f32.mrb[60].mxu0 }
 0x189   :  { %v791_v30 = vpop.f32.mrb[61].mxu0 }
 0x18a   :  { %v3419_v32 = vpop.f32.mrb[62].mxu0 }
 0x18b   :  { %v794_v33 = vpop.f32.mrb[63].mxu0 }
 0x190   :  { %v3421_v35 = vpop.f32.mrb[64].mxu0 }
 0x191   :  { %v799_v36 = vpop.f32.mrb[65].mxu0 }
 0x192   :  { %v3423_v38 = vpop.f32.mrb[66].mxu0 }
 0x193   :  { %v802_v39 = vpop.f32.mrb[67].mxu0 }
 0x198   :  { %v3425_v41 = vpop.f32.mrb[68].mxu0 }
 0x199   :  { %v807_v42 = vpop.f32.mrb[69].mxu0 }
 0x19a   :  { %v808_v44 = vpop.f32.mrb[70].mxu0 }
 0x19b   :  { %v948_v45 = vmax.f32 %v3305_v10, %v808_v44  ;;  %v810_v47 = vpop.f32.mrb[71].mxu0 }
 0x19d   :  { %v983_v56 = vmax.f32 %v948_v45, 0.0 }
 0x1a0   :  { %v813_v50 = vpop.f32.mrb[72].mxu0 }
 0x1a1   :  { %v949_v51 = vmax.f32 %v3310_v13, %v813_v50  ;;  %v815_v53 = vpop.f32.mrb[73].mxu0 }
 0x1a2   :  { %v816_v54 = vpop.f32.mrb[74].mxu0 }
 0x1a3   :  { %v984_v58 = vmax.f32 %v949_v51, 0.0  ;;  %v950_v60 = vmax.f32 %v3316_v16, %v816_v54  ;;  %v818_v62 = vpop.f32.mrb[75].mxu0 }
 0x1a5   :  { %v1018_v0 = vpack.c.bf16 %v984_v58, %v983_v56  ;;  %v985_v9 = vmax.f32 %v950_v60, 0.0 }
 0x1a7   :  { %1460 = vmatpush1.bf16.msra.mxu1 %v1018_v0 }
 0x1a8   :  { %v821_v3 = vpop.f32.mrb[76].mxu0  ;;  %1461 = vmatprep.subr.bf16.mxu1 %v3014_v1 }
 0x1a9   :  { %v951_v10 = vmax.f32 %v3321_v19, %v821_v3  ;;  %v823_v5 = vpop.f32.mrb[77].mxu0 }
 0x1aa   :  { %v824_v7 = vpop.f32.mrb[78].mxu0 }
 0x1ab   :  { %v986_v12 = vmax.f32 %v951_v10, 0.0  ;;  %v952_v13 = vmax.f32 %v3327_v22, %v824_v7  ;;  %v826_v15 = vpop.f32.mrb[79].mxu0 }
 0x1ad   :  { %v1019_v18 = vpack.c.bf16 %v986_v12, %v985_v9  ;;  %v987_v30 = vmax.f32 %v952_v13, 0.0 }
 0x1af   :  { %1462 = vmatpush1.bf16.msra.mxu1 %v1019_v18 }
 0x1b0   :  { %v829_v21 = vpop.f32.mrb[80].mxu0  ;;  %1463 = vmatprep.subr.bf16.mxu1 %v3014_v1 }
 0x1b1   :  { %v953_v16 = vmax.f32 %v3332_v25, %v829_v21  ;;  %v831_v24 = vpop.f32.mrb[81].mxu0 }
 0x1b2   :  { %v832_v27 = vpop.f32.mrb[82].mxu0 }
 0x1b3   :  { %v988_v33 = vmax.f32 %v953_v16, 0.0  ;;  %v954_v19 = vmax.f32 %v3338_v28, %v832_v27  ;;  %v834_v36 = vpop.f32.mrb[83].mxu0 }
 0x1b5   :  { %v1020_v39 = vpack.c.bf16 %v988_v33, %v987_v30  ;;  %v989_v47 = vmax.f32 %v954_v19, 0.0 }
 0x1b7   :  { %1464 = vmatpush1.bf16.msra.mxu1 %v1020_v39 }
 0x1b8   :  { %v837_v42 = vpop.f32.mrb[84].mxu0  ;;  %1465 = vmatprep.subr.bf16.mxu1 %v3014_v1 }
 0x1b9   :  { %v955_v22 = vmax.f32 %v3343_v31, %v837_v42  ;;  %v839_v44 = vpop.f32.mrb[85].mxu0 }
 0x1ba   :  { %v840_v45 = vpop.f32.mrb[86].mxu0 }
 0x1bb   :  { %v990_v48 = vmax.f32 %v955_v22, 0.0  ;;  %v956_v25 = vmax.f32 %v3349_v34, %v840_v45  ;;  %v842_v50 = vpop.f32.mrb[87].mxu0 }
 0x1bd   :  { %v1021_v51 = vpack.c.bf16 %v990_v48, %v989_v47  ;;  %v991_v58 = vmax.f32 %v956_v25, 0.0 }
 0x1bf   :  { %1466 = vmatpush1.bf16.msra.mxu1 %v1021_v51 }
 0x1c0   :  { %v845_v53 = vpop.f32.mrb[88].mxu0  ;;  %1467 = vmatprep.subr.bf16.mxu1 %v3014_v1 }
 0x1c1   :  { %v957_v28 = vmax.f32 %v3354_v37, %v845_v53  ;;  %v847_v54 = vpop.f32.mrb[89].mxu0 }
 0x1c2   :  { %v848_v56 = vpop.f32.mrb[90].mxu0 }
 0x1c3   :  { %v992_v60 = vmax.f32 %v957_v28, 0.0  ;;  %v958_v31 = vmax.f32 %v3360_v40, %v848_v56  ;;  %v850_v62 = vpop.f32.mrb[91].mxu0 }
 0x1c5   :  { %v1022_v0 = vpack.c.bf16 %v992_v60, %v991_v58  ;;  %v993_v7 = vmax.f32 %v958_v31, 0.0 }
 0x1c7   :  { %1468 = vmatpush1.bf16.msra.mxu1 %v1022_v0 }
 0x1c8   :  { %v853_v3 = vpop.f32.mrb[92].mxu0  ;;  %1469 = vmatprep.subr.bf16.mxu1 %v3014_v1 }
 0x1c9   :  { %v959_v34 = vmax.f32 %v3365_v43, %v853_v3  ;;  %v855_v10 = vpop.f32.mrb[93].mxu0 }
 0x1ca   :  { %v856_v5 = vpop.f32.mrb[94].mxu0 }
 0x1cb   :  { %v994_v9 = vmax.f32 %v959_v34, 0.0  ;;  %v960_v37 = vmax.f32 %v3371_v46, %v856_v5  ;;  %v858_v12 = vpop.f32.mrb[95].mxu0 }
 0x1cd   :  { %v1023_v13 = vpack.c.bf16 %v994_v9, %v993_v7  ;;  %v995_v16 = vmax.f32 %v960_v37, 0.0 }
 0x1cf   :  { %1470 = vmatpush1.bf16.msra.mxu1 %v1023_v13 }
 0x1d0   :  { %v861_v15 = vpop.f32.mrb[96].mxu0  ;;  %1471 = vmatprep.subr.bf16.mxu1 %v3014_v1 }
 0x1d1   :  { %v961_v40 = vmax.f32 %v3376_v49, %v861_v15  ;;  %v863_v18 = vpop.f32.mrb[97].mxu0 }
 0x1d2   :  { %v864_v21 = vpop.f32.mrb[98].mxu0 }
 0x1d3   :  { %v996_v24 = vmax.f32 %v961_v40, 0.0  ;;  %v962_v43 = vmax.f32 %v3382_v52, %v864_v21  ;;  %v866_v27 = vpop.f32.mrb[99].mxu0 }
 0x1d5   :  { %v1024_v30 = vpack.c.bf16 %v996_v24, %v995_v16  ;;  %v997_v39 = vmax.f32 %v962_v43, 0.0 }
 0x1d7   :  { %1472 = vmatpush1.bf16.msra.mxu1 %v1024_v30 }
 0x1d8   :  { %v869_v33 = vpop.f32.mrb[100].mxu0  ;;  %1473 = vmatprep.subr.bf16.mxu1 %v3014_v1 }
 0x1d9   :  { %v963_v46 = vmax.f32 %v3387_v55, %v869_v33  ;;  %v871_v19 = vpop.f32.mrb[101].mxu0 }
 0x1da   :  { %v872_v36 = vpop.f32.mrb[102].mxu0 }
 0x1db   :  { %v998_v42 = vmax.f32 %v963_v46, 0.0  ;;  %v964_v49 = vmax.f32 %v3389_v57, %v872_v36  ;;  %v874_v22 = vpop.f32.mrb[103].mxu0 }
 0x1dd   :  { %v1025_v44 = vpack.c.bf16 %v998_v42, %v997_v39  ;;  %v999_v25 = vmax.f32 %v964_v49, 0.0 }
 0x1df   :  { %1474 = vmatpush1.bf16.msra.mxu1 %v1025_v44 }
 0x1e0   :  { %v877_v45 = vpop.f32.mrb[104].mxu0  ;;  %1475 = vmatprep.subr.bf16.mxu1 %v3014_v1 }
 0x1e1   :  { %v965_v52 = vmax.f32 %v3391_v59, %v877_v45  ;;  %v879_v47 = vpop.f32.mrb[105].mxu0 }
 0x1e2   :  { %v880_v48 = vpop.f32.mrb[106].mxu0 }
 0x1e3   :  { %v1000_v50 = vmax.f32 %v965_v52, 0.0  ;;  %v966_v55 = vmax.f32 %v3393_v61, %v880_v48  ;;  %v882_v51 = vpop.f32.mrb[107].mxu0 }
 0x1e5   :  { %v1026_v53 = vpack.c.bf16 %v1000_v50, %v999_v25  ;;  %v1001_v58 = vmax.f32 %v966_v55, 0.0 }
 0x1e7   :  { %1476 = vmatpush1.bf16.msra.mxu1 %v1026_v53 }
 0x1e8   :  { %v885_v28 = vpop.f32.mrb[108].mxu0  ;;  %1477 = vmatprep.subr.bf16.mxu1 %v3014_v1 }
 0x1e9   :  { %v967_v57 = vmax.f32 %v3395_v63, %v885_v28  ;;  %v887_v54 = vpop.f32.mrb[109].mxu0 }
 0x1ea   :  { %v888_v56 = vpop.f32.mrb[110].mxu0 }
 0x1eb   :  { %v1002_v60 = vmax.f32 %v967_v57, 0.0  ;;  %v968_v59 = vmax.f32 %v3397_v2, %v888_v56  ;;  %v890_v31 = vpop.f32.mrb[111].mxu0 }
 0x1ec   :  { %v3015_v31 = vmov 0.0  }
 0x1ed   :  { %v1027_v62 = vpack.c.bf16 %v1002_v60, %v1001_v58  ;;  %v1003_v10 = vmax.f32 %v968_v59, 0.0  ;;  %v2873_v60 = vld [vmem:[%s3856_s2 + $0x1c] ss:$12 sps:$4 sm:$0xff]  }
 0x1ef   :  { %1478 = vmatpush1.bf16.msra.mxu1 %v1027_v62 }
 0x1f0   :  { %v893_v0 = vpop.f32.mrb[112].mxu0  ;;  %1479 = vmatprep.subr.bf16.mxu1 %v3014_v1 }
 0x1f1   :  { %v969_v61 = vmax.f32 %v3399_v4, %v893_v0  ;;  %v895_v3 = vpop.f32.mrb[113].mxu0 }
 0x1f2   :  { %v896_v34 = vpop.f32.mrb[114].mxu0 }
 0x1f3   :  { %v1004_v5 = vmax.f32 %v969_v61, 0.0  ;;  %v970_v63 = vmax.f32 %v3401_v6, %v896_v34  ;;  %v898_v7 = vpop.f32.mrb[115].mxu0 }
 0x1f5   :  { %v1028_v9 = vpack.c.bf16 %v1004_v5, %v1003_v10  ;;  %v1005_v15 = vmax.f32 %v970_v63, 0.0  ;;  %v2875_v63 = vld [vmem:[%s3856_s2 + $0x18] ss:$12 sps:$4 sm:$0xff]  }
 0x1f7   :  { %1480 = vmatpush1.bf16.msra.mxu1 %v1028_v9 }
 0x1f8   :  { %v901_v37 = vpop.f32.mrb[116].mxu0  ;;  %1481 = vmatprep.subr.bf16.mxu1 %v3014_v1 }
 0x1f9   :  { %v971_v2 = vmax.f32 %v3403_v8, %v901_v37  ;;  %v903_v12 = vpop.f32.mrb[117].mxu0  ;;  %v2879_v37 = vld [vmem:[%s3856_s2 + $0x4c] ss:$12 sps:$4 sm:$0xff]  }
 0x1fa   :  { %v904_v13 = vpop.f32.mrb[118].mxu0  ;;  %v2882_v12 = vld [vmem:[%s3856_s2 + $0x64] ss:$12 sps:$4 sm:$0xff]  }
 0x1fb   :  { %v1006_v40 = vmax.f32 %v971_v2, 0.0  ;;  %v972_v4 = vmax.f32 %v3405_v11, %v904_v13  ;;  %v906_v18 = vpop.f32.mrb[119].mxu0  ;;  %v2881_v2 = vld [vmem:[%s3856_s2 + $0x48] ss:$12 sps:$4 sm:$0xff]   ;;  %v2884_v13 = vld [vmem:[%s3856_s2 + $0x60] ss:$12 sps:$4 sm:$0xff]  }
 0x1fc   :  { %v2890_v18 = vld [vmem:[%s3856_s2 + $0x90] ss:$12 sps:$4 sm:$0xff]  }
 0x1fd   :  { %v1029_v21 = vpack.c.bf16 %v1006_v40, %v1005_v15  ;;  %v1007_v27 = vmax.f32 %v972_v4, 0.0  ;;  %v2885_v15 = vld [vmem:[%s3856_s2 + $0x7c] ss:$12 sps:$4 sm:$0xff]   ;;  %v2887_v40 = vld [vmem:[%s3856_s2 + $0x78] ss:$12 sps:$4 sm:$0xff]  }
 0x1fe   :  { %v2888_v4 = vld [vmem:[%s3856_s2 + $0x94] ss:$12 sps:$4 sm:$0xff]  }
 0x1ff   :  { %1482 = vmatpush1.bf16.msra.mxu1 %v1029_v21  ;;  %v2891_v21 = vld [vmem:[%s3856_s2 + $0xac] ss:$12 sps:$4 sm:$0xff]  }
 0x200   :  { %v909_v16 = vpop.f32.mrb[120].mxu0  ;;  %1483 = vmatprep.subr.bf16.mxu1 %v3014_v1 }
 0x201   :  { %v973_v6 = vmax.f32 %v3407_v14, %v909_v16  ;;  %v911_v24 = vpop.f32.mrb[121].mxu0  ;;  %v2893_v16 = vld [vmem:[%s3856_s2 + $0xa8] ss:$12 sps:$4 sm:$0xff]  }
 0x202   :  { %v912_v43 = vpop.f32.mrb[122].mxu0  ;;  %v2896_v24 = vld [vmem:[%s3856_s2 + $0xc0] ss:$12 sps:$4 sm:$0xff]  }
 0x203   :  { %v1008_v30 = vmax.f32 %v973_v6, 0.0  ;;  %v974_v8 = vmax.f32 %v3409_v17, %v912_v43  ;;  %v914_v33 = vpop.f32.mrb[123].mxu0  ;;  %v2894_v6 = vld [vmem:[%s3856_s2 + $0xc4] ss:$12 sps:$4 sm:$0xff]   ;;  %v2897_v43 = vld [vmem:[%s3856_s2 + $0xdc] ss:$12 sps:$4 sm:$0xff]  }
 0x204   :  { %v2903_v33 = vld [vmem:[%s3856_s2 + $0x10c] ss:$12 sps:$4 sm:$0xff]  }
 0x205   :  { %v1030_v46 = vpack.c.bf16 %v1008_v30, %v1007_v27  ;;  %v1009_v42 = vmax.f32 %v974_v8, 0.0  ;;  %v2899_v27 = vld [vmem:[%s3856_s2 + $0xd8] ss:$12 sps:$4 sm:$0xff]   ;;  %v2900_v30 = vld [vmem:[%s3856_s2 + $0xf4] ss:$12 sps:$4 sm:$0xff]  }
 0x206   :  { %v2902_v8 = vld [vmem:[%s3856_s2 + $0xf0] ss:$12 sps:$4 sm:$0xff]  }
 0x207   :  { %1484 = vmatpush1.bf16.msra.mxu1 %v1030_v46  ;;  %v2905_v46 = vld [vmem:[%s3856_s2 + $0x108] ss:$12 sps:$4 sm:$0xff]  }
 0x208   :  { %v917_v19 = vpop.f32.mrb[124].mxu0  ;;  %1485 = vmatprep.subr.bf16.mxu1 %v3014_v1 }
 0x209   :  { %v975_v11 = vmax.f32 %v3411_v20, %v917_v19  ;;  %v919_v36 = vpop.f32.mrb[125].mxu0  ;;  %v2906_v19 = vld [vmem:[%s3856_s2 + $0x124] ss:$12 sps:$4 sm:$0xff]  }
 0x20a   :  { %v920_v39 = vpop.f32.mrb[126].mxu0  ;;  %v2909_v36 = vld [vmem:[%s3856_s2 + $0x13c] ss:$12 sps:$4 sm:$0xff]  }
 0x20b   :  { %v1010_v49 = vmax.f32 %v975_v11, 0.0  ;;  %v976_v14 = vmax.f32 %v3413_v23, %v920_v39  ;;  %v922_v22 = vpop.f32.mrb[127].mxu0  ;;  %v2908_v11 = vld [vmem:[%s3856_s2 + $0x120] ss:$12 sps:$4 sm:$0xff]   ;;  %v2911_v39 = vld [vmem:[%s3856_s2 + $0x138] ss:$12 sps:$4 sm:$0xff]  }
 0x20c   :  { %v2917_v22 = vld [vmem:[%s3856_s2 + $0x168] ss:$12 sps:$4 sm:$0xff]  }
 0x20d   :  { %v1031_v44 = vpack.c.bf16 %v1010_v49, %v1009_v42  ;;  %v1011_v48 = vmax.f32 %v976_v14, 0.0  ;;  %v2912_v42 = vld [vmem:[%s3856_s2 + $0x154] ss:$12 sps:$4 sm:$0xff]   ;;  %v2914_v49 = vld [vmem:[%s3856_s2 + $0x150] ss:$12 sps:$4 sm:$0xff]  }
 0x20e   :  { %v2915_v14 = vld [vmem:[%s3856_s2 + $0x16c] ss:$12 sps:$4 sm:$0xff]  }
 0x20f   :  { %1486 = vmatpush1.bf16.msra.mxu1 %v1031_v44  ;;  %v2918_v44 = vld [vmem:[%s3856_s2 + $0x184] ss:$12 sps:$4 sm:$0xff]  }
 0x210   :  { %v925_v45 = vpop.f32.mrb[128].mxu0  ;;  %1487 = vmatprep.subr.bf16.mxu1 %v3014_v1 }
 0x211   :  { %v977_v17 = vmax.f32 %v3415_v26, %v925_v45  ;;  %v927_v52 = vpop.f32.mrb[129].mxu0  ;;  %v2920_v45 = vld [vmem:[%s3856_s2 + $0x180] ss:$12 sps:$4 sm:$0xff]  }
 0x212   :  { %v928_v47 = vpop.f32.mrb[130].mxu0  ;;  %v2923_v52 = vld [vmem:[%s3856_s2 + $0x198] ss:$12 sps:$4 sm:$0xff]  }
 0x213   :  { %v1012_v25 = vmax.f32 %v977_v17, 0.0  ;;  %v978_v20 = vmax.f32 %v3417_v29, %v928_v47  ;;  %v930_v50 = vpop.f32.mrb[131].mxu0  ;;  %v2870_v29 = vld [vmem:[%s3856_s2] ss:$12 sps:$4 sm:$0xff]   ;;  %v2921_v17 = vld [vmem:[%s3856_s2 + $0x19c] ss:$12 sps:$4 sm:$0xff]  }
 0x214   :  { %v2924_v47 = vld [vmem:[%s3856_s2 + $0x1b4] ss:$12 sps:$4 sm:$0xff]   ;;  %v2929_v50 = vld [vmem:[%s3856_s2 + $0x38] ss:$12 sps:$4 sm:$0xff]  }
 0x215   :  { %v1032_v55 = vpack.c.bf16 %v1012_v25, %v1011_v48  ;;  %v1013_v57 = vmax.f32 %v978_v20, 0.0  ;;  %v2926_v48 = vld [vmem:[%s3856_s2 + $0x1b0] ss:$12 sps:$4 sm:$0xff]   ;;  %v2927_v25 = vld [vmem:[%s3856_s2 + $0x8] ss:$12 sps:$4 sm:$0xff]  }
 0x216   :  { %v2928_v20 = vld [vmem:[%s3856_s2 + $0x20] ss:$12 sps:$4 sm:$0xff]  }
 0x217   :  { %1488 = vmatpush1.bf16.msra.mxu1 %v1032_v55  ;;  %v2930_v55 = vld [vmem:[%s3856_s2 + $0x50] ss:$12 sps:$4 sm:$0xff]  }
 0x218   :  { %v933_v51 = vpop.f32.mrb[132].mxu0  ;;  %1489 = vmatprep.subr.bf16.mxu1 %v3014_v1 }
 0x219   :  { %v979_v23 = vmax.f32 %v3419_v32, %v933_v51  ;;  %v935_v53 = vpop.f32.mrb[133].mxu0  ;;  %v2931_v51 = vld [vmem:[%s3856_s2 + $0x68] ss:$12 sps:$4 sm:$0xff]  }
 0x21a   :  { %v936_v28 = vpop.f32.mrb[134].mxu0  ;;  %v2933_v53 = vld [vmem:[%s3856_s2 + $0x98] ss:$12 sps:$4 sm:$0xff]  }
 0x21b   :  { %v1014_v54 = vmax.f32 %v979_v23, 0.0  ;;  %v980_v26 = vmax.f32 %v3421_v35, %v936_v28  ;;  %v938_v56 = vpop.f32.mrb[135].mxu0  ;;  %v2932_v23 = vld [vmem:[%s3856_s2 + $0x80] ss:$12 sps:$4 sm:$0xff]   ;;  %v2934_v28 = vld [vmem:[%s3856_s2 + $0xb0] ss:$12 sps:$4 sm:$0xff]  }
 0x21c   :  { %v2938_v56 = vld [vmem:[%s3856_s2 + $0x110] ss:$12 sps:$4 sm:$0xff]  }
 0x21d   :  { %v1033_v58 = vpack.c.bf16 %v1014_v54, %v1013_v57  ;;  %v1015_v35 = vmax.f32 %v980_v26, 0.0  ;;  %v2935_v57 = vld [vmem:[%s3856_s2 + $0xc8] ss:$12 sps:$4 sm:$0xff]   ;;  %v2936_v54 = vld [vmem:[%s3856_s2 + $0xe0] ss:$12 sps:$4 sm:$0xff]  }
 0x21e   :  { %v2937_v26 = vld [vmem:[%s3856_s2 + $0xf8] ss:$12 sps:$4 sm:$0xff]  }
 0x21f   :  { %1490 = vmatpush1.bf16.msra.mxu1 %v1033_v58  ;;  %v2939_v58 = vld [vmem:[%s3856_s2 + $0x128] ss:$12 sps:$4 sm:$0xff]  }
 0x220   :  { %v941_v59 = vpop.f32.mrb[136].mxu0  ;;  %2589 = vmatprep.subr.bf16.mxu1 %v3015_v31 }
 0x221   :  { %v981_v32 = vmax.f32 %v3423_v38, %v941_v59  ;;  %v943_v62 = vpop.f32.mrb[137].mxu0  ;;  %v2876_v38 = vld [vmem:[%s3856_s2 + $0x34] ss:$12 sps:$4 sm:$0xff]   ;;  %v2942_v59 = vld [vmem:[%s3856_s2 + $0x170] ss:$12 sps:$4 sm:$0xff]  }
 0x222   :  { %v944_v0 = vpop.f32.mrb[138].mxu0  ;;  %1492 = vmatmul.mubr.bf16.vlgmr.msra.gmra.mrb[0].mxu1 %v2870_v29  ;;  %v2940_v29 = vld [vmem:[%s3856_s2 + $0x140] ss:$12 sps:$4 sm:$0xff]  }
 0x223   :  { %v1016_v61 = vmax.f32 %v981_v32, 0.0  ;;  %v982_v3 = vmax.f32 %v3425_v41, %v944_v0  ;;  %1499 = vmatprep.mubr.bf16.mxu1 %v2873_v60  ;;  %v946_v34 = vpop.f32.mrb[139].mxu0  ;;  %v2878_v41 = vld [vmem:[%s3856_s2 + $0x30] ss:$12 sps:$4 sm:$0xff]   ;;  %v2941_v60 = vld [vmem:[%s3856_s2 + $0x158] ss:$12 sps:$4 sm:$0xff]  }
 0x224   :  { %v2943_v32 = vld [vmem:[%s3856_s2 + $0x188] ss:$12 sps:$4 sm:$0xff]   ;;  %v2944_v62 = vld [vmem:[%s3856_s2 + $0x1a0] ss:$12 sps:$4 sm:$0xff]   ;;  %v2945_v0 = vld [vmem:[%s3856_s2 + $0x1b8] ss:$12 sps:$4 sm:$0xff]  }
 0x225   :  { %v1034_v10 = vpack.c.bf16 %v1016_v61, %v1015_v35  ;;  %v1017_v5 = vmax.f32 %v982_v3, 0.0 }
 0x227   :  { %v1035_v7 = vpack.c.bf16 %v1017_v5, %v1017_v5  ;;  %2590 = vmatpush3.bf16.msra.mxu1 %v1034_v10 }
 0x228   :  { %2591 = vmatprep.subr.bf16.mxu1 %v3015_v31 }
 0x229   :  { %v1457_v9 = vsel %vm1455_vm2, %v1035_v7, 0 }
 0x22a   :  { %1500 = vmatmul.mubr.bf16.gmra.mrb[4].mxu1 %v2875_v63 }
 0x22b   :  { %2592 = vmatpush3.bf16.msra.mxu1 %v1457_v9  ;;  %1507 = vmatprep.mubr.bf16.mxu1 %v2876_v38 }
 0x22c   :  { %2284 = vmatprep.subr.bf16.mxu1 %v3014_v1 }
 0x232   :  { %1508 = vmatmul.mubr.bf16.gmra.mrb[8].mxu1 %v2878_v41 }
 0x233   :  { %1515 = vmatprep.mubr.bf16.mxu1 %v2879_v37 }
 0x23a   :  { %1516 = vmatmul.mubr.bf16.gmra.mrb[12].mxu1 %v2881_v2 }
 0x23b   :  { %1523 = vmatprep.mubr.bf16.mxu1 %v2882_v12 }
 0x242   :  { %1524 = vmatmul.mubr.bf16.gmra.mrb[16].mxu1 %v2884_v13 }
 0x243   :  { %1531 = vmatprep.mubr.bf16.mxu1 %v2885_v15  ;;  %v2948_v15 = vld [vmem:[%s3857_s3 + $0x4] ss:$8 sps:$4 sm:$0xff]  }
 0x244   :  { %2557 = vmatprep.mubr.msk.bf16.mxu0 %vm1397_vm4, %v2948_v15 }
 0x24a   :  { %1532 = vmatmul.mubr.bf16.gmra.mrb[20].mxu1 %v2887_v40 }
 0x24b   :  { %1539 = vmatprep.mubr.bf16.mxu1 %v2888_v4 }
 0x252   :  { %1540 = vmatmul.mubr.bf16.gmra.mrb[24].mxu1 %v2890_v18 }
 0x253   :  { %1547 = vmatprep.mubr.bf16.mxu1 %v2891_v21 }
 0x25a   :  { %1548 = vmatmul.mubr.bf16.gmra.mrb[28].mxu1 %v2893_v16 }
 0x25b   :  { %1555 = vmatprep.mubr.bf16.mxu1 %v2894_v6 }
 0x262   :  { %1556 = vmatmul.mubr.bf16.gmra.mrb[32].mxu1 %v2896_v24 }
 0x263   :  { %1563 = vmatprep.mubr.bf16.mxu1 %v2897_v43 }
 0x26a   :  { %1564 = vmatmul.mubr.bf16.gmra.mrb[36].mxu1 %v2899_v27 }
 0x26b   :  { %1571 = vmatprep.mubr.bf16.mxu1 %v2900_v30 }
 0x272   :  { %1572 = vmatmul.mubr.bf16.gmra.mrb[40].mxu1 %v2902_v8 }
 0x273   :  { %1579 = vmatprep.mubr.bf16.mxu1 %v2903_v33 }
 0x27a   :  { %1580 = vmatmul.mubr.bf16.gmra.mrb[44].mxu1 %v2905_v46 }
 0x27b   :  { %1587 = vmatprep.mubr.bf16.mxu1 %v2906_v19 }
 0x282   :  { %1588 = vmatmul.mubr.bf16.gmra.mrb[48].mxu1 %v2908_v11 }
 0x283   :  { %1595 = vmatprep.mubr.bf16.mxu1 %v2909_v36 }
 0x28a   :  { %1596 = vmatmul.mubr.bf16.gmra.mrb[52].mxu1 %v2911_v39 }
 0x28b   :  { %1603 = vmatprep.mubr.bf16.mxu1 %v2912_v42 }
 0x292   :  { %1604 = vmatmul.mubr.bf16.gmra.mrb[56].mxu1 %v2914_v49 }
 0x293   :  { %1611 = vmatprep.mubr.bf16.mxu1 %v2915_v14 }
 0x29a   :  { %1612 = vmatmul.mubr.bf16.gmra.mrb[60].mxu1 %v2917_v22 }
 0x29b   :  { %1619 = vmatprep.mubr.bf16.mxu1 %v2918_v44 }
 0x2a2   :  { %1620 = vmatmul.mubr.bf16.gmra.mrb[64].mxu1 %v2920_v45 }
 0x2a3   :  { %1627 = vmatprep.mubr.bf16.mxu1 %v2921_v17 }
 0x2aa   :  { %1628 = vmatmul.mubr.bf16.gmra.mrb[68].mxu1 %v2923_v52 }
 0x2ab   :  { %1635 = vmatprep.mubr.bf16.mxu1 %v2924_v47 }
 0x2b2   :  { %1636 = vmatmul.mubr.bf16.gmra.mrb[72].mxu1 %v2926_v48 }
 0x2b3   :  { %2593 = vmatprep.mubr.msk.bf16.mxu1 %vm3016_vm3, %v3015_v31 }
 0x2ba   :  { %2594 = vmatmul.mubr.msk.bf16.vlgmr.msra.gmra.mrb[0].mxu1 %vm1397_vm4, %v2927_v25 }
 0x2bb   :  { %2597 = vmatprep.mubr.msk.bf16.mxu1 %vm3016_vm3, %v3015_v31 }
 0x2c2   :  { %2598 = vmatmul.mubr.msk.bf16.gmra.mrb[4].mxu1 %vm1397_vm4, %v2928_v20 }
 0x2c3   :  { %2601 = vmatprep.mubr.msk.bf16.mxu1 %vm3016_vm3, %v3015_v31 }
 0x2ca   :  { %2602 = vmatmul.mubr.msk.bf16.gmra.mrb[8].mxu1 %vm1397_vm4, %v2929_v50 }
 0x2cb   :  { %2605 = vmatprep.mubr.msk.bf16.mxu1 %vm3016_vm3, %v3015_v31 }
 0x2d2   :  { %2606 = vmatmul.mubr.msk.bf16.gmra.mrb[12].mxu1 %vm1397_vm4, %v2930_v55 }
 0x2d3   :  { %2609 = vmatprep.mubr.msk.bf16.mxu1 %vm3016_vm3, %v3015_v31 }
 0x2da   :  { %2610 = vmatmul.mubr.msk.bf16.gmra.mrb[16].mxu1 %vm1397_vm4, %v2931_v51 }
 0x2db   :  { %2613 = vmatprep.mubr.msk.bf16.mxu1 %vm3016_vm3, %v3015_v31 }
 0x2e2   :  { %2614 = vmatmul.mubr.msk.bf16.gmra.mrb[20].mxu1 %vm1397_vm4, %v2932_v23 }
 0x2e3   :  { %2617 = vmatprep.mubr.msk.bf16.mxu1 %vm3016_vm3, %v3015_v31 }
 0x2ea   :  { %2618 = vmatmul.mubr.msk.bf16.gmra.mrb[24].mxu1 %vm1397_vm4, %v2933_v53 }
 0x2eb   :  { %2621 = vmatprep.mubr.msk.bf16.mxu1 %vm3016_vm3, %v3015_v31 }
 0x2f2   :  { %2622 = vmatmul.mubr.msk.bf16.gmra.mrb[28].mxu1 %vm1397_vm4, %v2934_v28 }
 0x2f3   :  { %2625 = vmatprep.mubr.msk.bf16.mxu1 %vm3016_vm3, %v3015_v31 }
 0x2fa   :  { %2626 = vmatmul.mubr.msk.bf16.gmra.mrb[32].mxu1 %vm1397_vm4, %v2935_v57 }
 0x2fb   :  { %2629 = vmatprep.mubr.msk.bf16.mxu1 %vm3016_vm3, %v3015_v31 }
 0x302   :  { %2630 = vmatmul.mubr.msk.bf16.gmra.mrb[36].mxu1 %vm1397_vm4, %v2936_v54 }
 0x303   :  { %2633 = vmatprep.mubr.msk.bf16.mxu1 %vm3016_vm3, %v3015_v31 }
 0x30a   :  { %2634 = vmatmul.mubr.msk.bf16.gmra.mrb[40].mxu1 %vm1397_vm4, %v2937_v26 }
 0x30b   :  { %2637 = vmatprep.mubr.msk.bf16.mxu1 %vm3016_vm3, %v3015_v31 }
 0x312   :  { %2638 = vmatmul.mubr.msk.bf16.gmra.mrb[44].mxu1 %vm1397_vm4, %v2938_v56 }
 0x313   :  { %2641 = vmatprep.mubr.msk.bf16.mxu1 %vm3016_vm3, %v3015_v31 }
 0x31a   :  { %2642 = vmatmul.mubr.msk.bf16.gmra.mrb[48].mxu1 %vm1397_vm4, %v2939_v58 }
 0x31b   :  { %2645 = vmatprep.mubr.msk.bf16.mxu1 %vm3016_vm3, %v3015_v31 }
 0x322   :  { %2646 = vmatmul.mubr.msk.bf16.gmra.mrb[52].mxu1 %vm1397_vm4, %v2940_v29 }
 0x323   :  { %2649 = vmatprep.mubr.msk.bf16.mxu1 %vm3016_vm3, %v3015_v31 }
 0x32a   :  { %2650 = vmatmul.mubr.msk.bf16.gmra.mrb[56].mxu1 %vm1397_vm4, %v2941_v60 }
 0x32b   :  { %2653 = vmatprep.mubr.msk.bf16.mxu1 %vm3016_vm3, %v3015_v31 }
 0x332   :  { %2654 = vmatmul.mubr.msk.bf16.gmra.mrb[60].mxu1 %vm1397_vm4, %v2942_v59 }
 0x333   :  { %2657 = vmatprep.mubr.msk.bf16.mxu1 %vm3016_vm3, %v3015_v31 }
 0x33a   :  { %2658 = vmatmul.mubr.msk.bf16.gmra.mrb[64].mxu1 %vm1397_vm4, %v2943_v32 }
 0x33b   :  { %2661 = vmatprep.mubr.msk.bf16.mxu1 %vm3016_vm3, %v3015_v31 }
 0x342   :  { %2662 = vmatmul.mubr.msk.bf16.gmra.mrb[68].mxu1 %vm1397_vm4, %v2944_v62 }
 0x343   :  { %2665 = vmatprep.mubr.msk.bf16.mxu1 %vm3016_vm3, %v3015_v31 }
 0x34a   :  { %2666 = vmatmul.mubr.msk.bf16.gmra.mrb[72].mxu1 %vm1397_vm4, %v2945_v0 }
 0x38d   :  { %v1678_v35 = vpop.f32.mrb[0].mxu1 }
 0x38e   :  { %v2595_v61 = vpop.f32.mrb[1].mxu1 }
 0x38f   :  { %v1681_v3 = vpop.f32.mrb[2].mxu1 }
 0x390   :  { %v2596_v34 = vpop.f32.mrb[3].mxu1 }
 0x395   :  { %v1686_v10 = vpop.f32.mrb[4].mxu1 }
 0x396   :  { %v2599_v5 = vpop.f32.mrb[5].mxu1 }
 0x397   :  { %v1689_v63 = vpop.f32.mrb[6].mxu1 }
 0x398   :  { %v2600_v7 = vpop.f32.mrb[7].mxu1 }
 0x39d   :  { %v1694_v38 = vpop.f32.mrb[8].mxu1 }
 0x39e   :  { %v2603_v9 = vpop.f32.mrb[9].mxu1 }
 0x39f   :  { %v1697_v41 = vpop.f32.mrb[10].mxu1 }
 0x3a0   :  { %v2604_v37 = vpop.f32.mrb[11].mxu1 }
 0x3a5   :  { %v3709_v2 = vpop.f32.mrb[12].mxu1 }
 0x3a6   :  { %v2607_v31 = vpop.f32.mrb[13].mxu1 }
 0x3a7   :  { %v3711_v12 = vpop.f32.mrb[14].mxu1 }
 0x3a8   :  { %v2608_v13 = vpop.f32.mrb[15].mxu1 }
 0x3ad   :  { %v3717_v40 = vpop.f32.mrb[16].mxu1 }
 0x3ae   :  { %v2611_v4 = vpop.f32.mrb[17].mxu1 }
 0x3af   :  { %v3719_v18 = vpop.f32.mrb[18].mxu1 }
 0x3b0   :  { %v2612_v21 = vpop.f32.mrb[19].mxu1 }
 0x3b5   :  { %v3721_v16 = vpop.f32.mrb[20].mxu1 }
 0x3b6   :  { %v2615_v6 = vpop.f32.mrb[21].mxu1 }
 0x3b7   :  { %v3723_v24 = vpop.f32.mrb[22].mxu1 }
 0x3b8   :  { %v2616_v43 = vpop.f32.mrb[23].mxu1 }
 0x3bd   :  { %v3725_v27 = vpop.f32.mrb[24].mxu1 }
 0x3be   :  { %v2619_v30 = vpop.f32.mrb[25].mxu1 }
 0x3bf   :  { %v3727_v8 = vpop.f32.mrb[26].mxu1 }
 0x3c0   :  { %v2620_v33 = vpop.f32.mrb[27].mxu1 }
 0x3c5   :  { %v3729_v46 = vpop.f32.mrb[28].mxu1 }
 0x3c6   :  { %v2623_v19 = vpop.f32.mrb[29].mxu1 }
 0x3c7   :  { %v3731_v11 = vpop.f32.mrb[30].mxu1 }
 0x3c8   :  { %v2624_v36 = vpop.f32.mrb[31].mxu1 }
 0x3cd   :  { %v3733_v39 = vpop.f32.mrb[32].mxu1 }
 0x3ce   :  { %v2627_v42 = vpop.f32.mrb[33].mxu1 }
 0x3cf   :  { %v3735_v49 = vpop.f32.mrb[34].mxu1 }
 0x3d0   :  { %v2628_v14 = vpop.f32.mrb[35].mxu1 }
 0x3d5   :  { %v3737_v22 = vpop.f32.mrb[36].mxu1 }
 0x3d6   :  { %v2631_v44 = vpop.f32.mrb[37].mxu1 }
 0x3d7   :  { %v1753_v45 = vpop.f32.mrb[38].mxu1 }
 0x3d8   :  { %v1829_v17 = vmax.f32 %v1678_v35, %v1753_v45  ;;  %v2632_v52 = vpop.f32.mrb[39].mxu1 }
 0x3da   :  { %v1848_v50 = vmax.f32 %v1829_v17, 0.0 }
 0x3dd   :  { %v1758_v47 = vpop.f32.mrb[40].mxu1 }
 0x3de   :  { %v1830_v48 = vmax.f32 %v1681_v3, %v1758_v47  ;;  %v2635_v25 = vpop.f32.mrb[41].mxu1 }
 0x3df   :  { %v1761_v20 = vpop.f32.mrb[42].mxu1 }
 0x3e0   :  { %v1849_v55 = vmax.f32 %v1830_v48, 0.0  ;;  %v1831_v51 = vmax.f32 %v1686_v10, %v1761_v20  ;;  %v2636_v23 = vpop.f32.mrb[43].mxu1 }
 0x3e2   :  { %v1867_v53 = vpack.c.bf16 %v1849_v55, %v1848_v50  ;;  %v1850_v56 = vmax.f32 %v1831_v51, 0.0 }
 0x3e4   :  { %2003 = vmatpush1.bf16.msra.mxu0 %v1867_v53 }
 0x3e5   :  { %v1766_v28 = vpop.f32.mrb[44].mxu1  ;;  %2004 = vmatprep.subr.bf16.mxu0 %v3014_v1 }
 0x3e6   :  { %v1832_v57 = vmax.f32 %v1689_v63, %v1766_v28  ;;  %v2639_v54 = vpop.f32.mrb[45].mxu1 }
 0x3e7   :  { %v1769_v26 = vpop.f32.mrb[46].mxu1 }
 0x3e8   :  { %v1851_v58 = vmax.f32 %v1832_v57, 0.0  ;;  %v1833_v29 = vmax.f32 %v1694_v38, %v1769_v26  ;;  %v2640_v60 = vpop.f32.mrb[47].mxu1 }
 0x3ea   :  { %v1868_v59 = vpack.c.bf16 %v1851_v58, %v1850_v56  ;;  %v1852_v61 = vmax.f32 %v1833_v29, 0.0 }
 0x3ec   :  { %2005 = vmatpush1.bf16.msra.mxu0 %v1868_v59 }
 0x3ed   :  { %v1774_v32 = vpop.f32.mrb[48].mxu1  ;;  %2006 = vmatprep.subr.bf16.mxu0 %v3014_v1 }
 0x3ee   :  { %v1834_v62 = vmax.f32 %v1697_v41, %v1774_v32  ;;  %v2643_v0 = vpop.f32.mrb[49].mxu1 }
 0x3ef   :  { %v1777_v35 = vpop.f32.mrb[50].mxu1 }
 0x3f0   :  { %v1853_v3 = vmax.f32 %v1834_v62, 0.0  ;;  %v1835_v34 = vmax.f32 %v3709_v2, %v1777_v35  ;;  %v2644_v10 = vpop.f32.mrb[51].mxu1 }
 0x3f1   :  { %v2954_v10 = vld [vmem:[%s3857_s3 + $0x20] ss:$8 sps:$4 sm:$0xff]  }
 0x3f2   :  { %v1869_v5 = vpack.c.bf16 %v1853_v3, %v1852_v61  ;;  %v1854_v37 = vmax.f32 %v1835_v34, 0.0  ;;  %v2946_v3 = vld [vmem:[%s3857_s3] ss:$8 sps:$4 sm:$0xff]   ;;  %v2952_v34 = vld [vmem:[%s3857_s3 + $0x24] ss:$8 sps:$4 sm:$0xff]  }
 0x3f4   :  { %2007 = vmatpush1.bf16.msra.mxu0 %v1869_v5  ;;  %v2955_v5 = vld [vmem:[%s3857_s3 + $0x34] ss:$8 sps:$4 sm:$0xff]  }
 0x3f5   :  { %v1782_v63 = vpop.f32.mrb[52].mxu1  ;;  %2008 = vmatprep.subr.bf16.mxu0 %v3014_v1 }
 0x3f6   :  { %v1836_v7 = vmax.f32 %v3711_v12, %v1782_v63  ;;  %v2647_v38 = vpop.f32.mrb[53].mxu1  ;;  %v2957_v63 = vld [vmem:[%s3857_s3 + $0x30] ss:$8 sps:$4 sm:$0xff]  }
 0x3f7   :  { %v1785_v9 = vpop.f32.mrb[54].mxu1  ;;  %v2960_v38 = vld [vmem:[%s3857_s3 + $0x40] ss:$8 sps:$4 sm:$0xff]  }
 0x3f8   :  { %v1855_v31 = vmax.f32 %v1836_v7, 0.0  ;;  %v1837_v41 = vmax.f32 %v3717_v40, %v1785_v9  ;;  %v2648_v13 = vpop.f32.mrb[55].mxu1  ;;  %v2958_v7 = vld [vmem:[%s3857_s3 + $0x44] ss:$8 sps:$4 sm:$0xff]   ;;  %v2961_v9 = vld [vmem:[%s3857_s3 + $0x54] ss:$8 sps:$4 sm:$0xff]  }
 0x3f9   :  { %v2967_v13 = vld [vmem:[%s3857_s3 + $0x74] ss:$8 sps:$4 sm:$0xff]  }
 0x3fa   :  { %v1870_v15 = vpack.c.bf16 %v1855_v31, %v1854_v37  ;;  %v1856_v43 = vmax.f32 %v1837_v41, 0.0  ;;  %v2963_v37 = vld [vmem:[%s3857_s3 + $0x50] ss:$8 sps:$4 sm:$0xff]   ;;  %v2964_v31 = vld [vmem:[%s3857_s3 + $0x64] ss:$8 sps:$4 sm:$0xff]  }
 0x3fb   :  { %v2966_v41 = vld [vmem:[%s3857_s3 + $0x60] ss:$8 sps:$4 sm:$0xff]  }
 0x3fc   :  { %2009 = vmatpush1.bf16.msra.mxu0 %v1870_v15  ;;  %v1893_v15 = vld [vmem:[%s3857_s3 + $0x80] sm:$0xff] }
 0x3fd   :  { %v1790_v4 = vpop.f32.mrb[56].mxu1  ;;  %2010 = vmatprep.subr.bf16.mxu0 %v3014_v1 }
 0x3fe   :  { %v1838_v2 = vmax.f32 %v3719_v18, %v1790_v4  ;;  %v2651_v21 = vpop.f32.mrb[57].mxu1  ;;  %v2969_v4 = vld [vmem:[%s3857_s3 + $0x70] ss:$8 sps:$4 sm:$0xff]  }
 0x3ff   :  { %v1793_v6 = vpop.f32.mrb[58].mxu1  ;;  %v2555_v21 = vcombine.low %v1893_v15, %v1893_v15 }
 0x400   :  { %v1857_v30 = vmax.f32 %v1838_v2, 0.0  ;;  %v1839_v12 = vmax.f32 %v3721_v16, %v1793_v6  ;;  %v2652_v33 = vpop.f32.mrb[59].mxu1  ;;  %v2556_v2 = vcombine.high %v1893_v15, %v1893_v15  ;;  %v3017_v6 = vmov 1966171168  }
 0x402   :  { %v1871_v19 = vpack.c.bf16 %v1857_v30, %v1856_v43  ;;  %v1858_v44 = vmax.f32 %v1839_v12, 0.0  ;;  %v2263_v43 = vunpack.c.l.s4 %v3017_v6  ;;  %v2265_v30 = vlaneseq }
 0x404   :  { %2011 = vmatpush1.bf16.msra.mxu0 %v1871_v19  ;;  %v2264_v12 = vunpack.c.0.s8 %v2263_v43  ;;  %v2266_v33 = vshrl.u32 %v2265_v30, 7  ;;  %v3821_v19 = vld.sshfl [vmem:[%s3858_s4] sm:$0x11 pattern:$0x75316420] }
 0x405   :  { %v1798_v36 = vpop.f32.mrb[60].mxu1  ;;  %2012 = vmatprep.subr.bf16.mxu0 %v3014_v1 }
 0x406   :  { %v1840_v40 = vmax.f32 %v3723_v24, %v1798_v36  ;;  %v2655_v42 = vpop.f32.mrb[61].mxu1  ;;  %v2261_v36 = vcombine.high %v3821_v19, %v3821_v19 }
 0x407   :  { %v1801_v14 = vpop.f32.mrb[62].mxu1 }
 0x408   :  { %v1859_v45 = vmax.f32 %v1840_v40, 0.0  ;;  %v1841_v18 = vmax.f32 %v3725_v27, %v1801_v14  ;;  %v2656_v17 = vpop.f32.mrb[63].mxu1  ;;  %v3825_v40 = vsub.s32 %v2264_v12, %v2266_v33 }
 0x40a   :  { %v1872_v52 = vpack.c.bf16 %v1859_v45, %v1858_v44  ;;  %v1860_v20 = vmax.f32 %v1841_v18, 0.0  ;;  %v2268_v42 = vrot.slane %v3821_v19, %v3825_v40  ;;  %v2275_v14 = vrot.slane %v2261_v36, %v3825_v40 }
 0x40c   :  { %2013 = vmatpush1.bf16.msra.mxu0 %v1872_v52  ;;  %2567 = vmatprep.mubr.msk.bf16.mxu1 %vm2277_vm5, %v2275_v14 }
 0x40d   :  { %v1806_v47 = vpop.f32.mrb[64].mxu1  ;;  %2014 = vmatprep.subr.bf16.mxu0 %v3014_v1 }
 0x40e   :  { %v1842_v16 = vmax.f32 %v3727_v8, %v1806_v47  ;;  %v2659_v48 = vpop.f32.mrb[65].mxu1 }
 0x40f   :  { %v1809_v25 = vpop.f32.mrb[66].mxu1 }
 0x410   :  { %v1861_v50 = vmax.f32 %v1842_v16, 0.0  ;;  %v1843_v24 = vmax.f32 %v3729_v46, %v1809_v25  ;;  %v2660_v55 = vpop.f32.mrb[67].mxu1 }
 0x412   :  { %v1873_v51 = vpack.c.bf16 %v1861_v50, %v1860_v20  ;;  %v1862_v57 = vmax.f32 %v1843_v24, 0.0 }
 0x414   :  { %2015 = vmatpush1.bf16.msra.mxu0 %v1873_v51 }
 0x415   :  { %v1814_v23 = vpop.f32.mrb[68].mxu1  ;;  %2016 = vmatprep.subr.bf16.mxu0 %v3014_v1 }
 0x416   :  { %v1844_v27 = vmax.f32 %v3731_v11, %v1814_v23  ;;  %v2663_v53 = vpop.f32.mrb[69].mxu1 }
 0x417   :  { %v1817_v28 = vpop.f32.mrb[70].mxu1 }
 0x418   :  { %v1863_v54 = vmax.f32 %v1844_v27, 0.0  ;;  %v1845_v8 = vmax.f32 %v3733_v39, %v1817_v28  ;;  %v2664_v26 = vpop.f32.mrb[71].mxu1 }
 0x41a   :  { %v1874_v56 = vpack.c.bf16 %v1863_v54, %v1862_v57  ;;  %v1864_v59 = vmax.f32 %v1845_v8, 0.0 }
 0x41c   :  { %2017 = vmatpush1.bf16.msra.mxu0 %v1874_v56 }
 0x41d   :  { %v1822_v58 = vpop.f32.mrb[72].mxu1  ;;  %2018 = vmatprep.subr.bf16.mxu0 %v3014_v1 }
 0x41e   :  { %v1846_v46 = vmax.f32 %v3735_v49, %v1822_v58  ;;  %v2667_v29 = vpop.f32.mrb[73].mxu1  ;;  %v2949_v49 = vld [vmem:[%s3857_s3 + $0x14] ss:$8 sps:$4 sm:$0xff]  }
 0x41f   :  { %v1825_v60 = vpop.f32.mrb[74].mxu1 }
 0x420   :  { %v1865_v32 = vmax.f32 %v1846_v46, 0.0  ;;  %v1847_v11 = vmax.f32 %v3737_v22, %v1825_v60  ;;  %v2668_v62 = vpop.f32.mrb[75].mxu1  ;;  %v2951_v22 = vld [vmem:[%s3857_s3 + $0x10] ss:$8 sps:$4 sm:$0xff]   ;;  %s3018_s3 = smov [#allocation2]  }
 0x421   :  { %s2335_s4 = sshll.u32 %s3018_s3, 4  ;;  %s2336_s4 = int_to_ptr.vmem [resolvable:$true] %s2335_s4 }
 0x422   :  { %v1875_v0 = vpack.c.bf16 %v1865_v32, %v1864_v59  ;;  %v1866_v35 = vmax.f32 %v1847_v11, 0.0  ;;  %s2990_s19 = scalar_lea.vmem %s2336_s4, 16  ;;  %s2994_s20 = scalar_lea.vmem %s2336_s4, 32 }
 0x423   :  { %p2991_p0 = scmp.ne.s32.totalorder %s2336_s4, %s2990_s19  ;;  %p2995_p1 = scmp.lt.s32.totalorder %s2336_s4, %s2336_s4 }
 0x424   :  { %v1876_v61 = vpack.c.bf16 %v1866_v35, %v1866_v35  ;;  %2019 = vmatpush1.bf16.msra.mxu0 %v1875_v0  ;;  %p2996_p2 = scmp.lt.s32.totalorder %s2994_s20, %s2990_s19 }
 0x425   :  { %2020 = vmatprep.subr.bf16.mxu0 %v3014_v1 }
 0x426   :  { %v2000_v39 = vsel %vm1455_vm2, %v1876_v61, 0  ;;  %p2997_p3 = por %p2996_p2, %p2995_p1 }
 0x428   :  { %2021 = vmatpush1.bf16.msra.mxu0 %v2000_v39  ;;  %p2998_p4 = pnand %p2997_p3, %p2991_p0 }
 0x42b   :  { %2035 = vmatmul.mubr.bf16.vlgmr.msra.gmra.mrb[140].mxu0 %v2946_v3 }
 0x42c   :  { %2558 = vmatprep.mubr.msk.bf16.mxu0 %vm1397_vm4, %v2949_v49 }
 0x433   :  { %2043 = vmatmul.mubr.bf16.gmra.mrb[144].mxu0 %v2951_v22 }
 0x434   :  { %2559 = vmatprep.mubr.msk.bf16.mxu0 %vm1397_vm4, %v2952_v34 }
 0x43b   :  { %2051 = vmatmul.mubr.bf16.gmra.mrb[148].mxu0 %v2954_v10 }
 0x43c   :  { %2560 = vmatprep.mubr.msk.bf16.mxu0 %vm1397_vm4, %v2955_v5 }
 0x443   :  { %2059 = vmatmul.mubr.bf16.gmra.mrb[152].mxu0 %v2957_v63 }
 0x444   :  { %2561 = vmatprep.mubr.msk.bf16.mxu0 %vm1397_vm4, %v2958_v7 }
 0x44b   :  { %2067 = vmatmul.mubr.bf16.gmra.mrb[156].mxu0 %v2960_v38 }
 0x44c   :  { %2562 = vmatprep.mubr.msk.bf16.mxu0 %vm1397_vm4, %v2961_v9 }
 0x453   :  { %2075 = vmatmul.mubr.bf16.gmra.mrb[160].mxu0 %v2963_v37 }
 0x454   :  { %2563 = vmatprep.mubr.msk.bf16.mxu0 %vm1397_vm4, %v2964_v31 }
 0x45b   :  { %2083 = vmatmul.mubr.bf16.gmra.mrb[164].mxu0 %v2966_v41 }
 0x45c   :  { %2564 = vmatprep.mubr.msk.bf16.mxu0 %vm1397_vm4, %v2967_v13 }
 0x463   :  { %2091 = vmatmul.mubr.bf16.gmra.mrb[168].mxu0 %v2969_v4 }
 0x464   :  { %2565 = vmatprep.mubr.msk.bf16.mxu0 %vm1397_vm4, %v2556_v2 }
 0x46b   :  { %2099 = vmatmul.mubr.bf16.gmra.mrb[172].mxu0 %v2555_v21 }
 0x4fe   :  { %v2036_v44 = vpop.f32.mrb[140].mxu0 }
 0x4ff   :  { %v2141_v45 = vmul.f32 0.5, %v2036_v44  ;;  %v2038_v18 = vpop.f32.mrb[141].mxu0 }
 0x500   :  { %v2039_v17 = vpop.f32.mrb[142].mxu0 }
 0x501   :  { %2972 = vtanh.f32 %v2141_v45  ;;  %v2142_v52 = vmul.f32 0.5, %v2039_v17  ;;  %v2041_v47 = vpop.f32.mrb[143].mxu0 }
 0x503   :  { %2974 = vtanh.f32 %v2142_v52 }
 0x506   :  { %v2044_v16 = vpop.f32.mrb[144].mxu0 }
 0x507   :  { %v2143_v48 = vmul.f32 0.5, %v2044_v16  ;;  %v2046_v25 = vpop.f32.mrb[145].mxu0 }
 0x508   :  { %v2047_v20 = vpop.f32.mrb[146].mxu0 }
 0x509   :  { %2976 = vtanh.f32 %v2143_v48  ;;  %v2144_v50 = vmul.f32 0.5, %v2047_v20  ;;  %v2049_v24 = vpop.f32.mrb[147].mxu0 }
 0x50b   :  { %v2973_v55 = vpop.eup %2972  ;;  %2978 = vtanh.f32 %v2144_v50 }
 0x50c   :  { %v2175_v51 = vadd.f32 1.0, %v2973_v55 }
 0x50d   :  { %v2975_v23 = vpop.eup %2974 }
 0x50e   :  { %v2176_v27 = vadd.f32 1.0, %v2975_v23  ;;  %v2052_v53 = vpop.f32.mrb[148].mxu0  ;;  %v2192_v54 = vmul.f32 0.5, %v2175_v51 }
 0x50f   :  { %v2145_v28 = vmul.f32 0.5, %v2052_v53  ;;  %v2054_v57 = vpop.f32.mrb[149].mxu0 }
 0x510   :  { %v2193_v8 = vmul.f32 0.5, %v2176_v27  ;;  %v2055_v26 = vpop.f32.mrb[150].mxu0 }
 0x511   :  { %2980 = vtanh.f32 %v2145_v28  ;;  %v2146_v56 = vmul.f32 0.5, %v2055_v26  ;;  %v2057_v58 = vpop.f32.mrb[151].mxu0 }
 0x512   :  { %v2243_v46 = vpack.c.bf16 %v2193_v8, %v2192_v54 }
 0x513   :  { %v2977_v29 = vpop.eup %2976  ;;  %2982 = vtanh.f32 %v2146_v56 }
 0x514   :  { %v2177_v60 = vadd.f32 1.0, %v2977_v29  ;;  %2285 = vmatpush1.bf16.msra.mxu1 %v2243_v46 }
 0x515   :  { %v2979_v59 = vpop.eup %2978  ;;  %2286 = vmatprep.subr.bf16.mxu1 %v3014_v1 }
 0x516   :  { %v2178_v32 = vadd.f32 1.0, %v2979_v59  ;;  %v2060_v11 = vpop.f32.mrb[152].mxu0  ;;  %v2194_v35 = vmul.f32 0.5, %v2177_v60 }
 0x517   :  { %v2147_v62 = vmul.f32 0.5, %v2060_v11  ;;  %v2062_v0 = vpop.f32.mrb[153].mxu0 }
 0x518   :  { %v2195_v61 = vmul.f32 0.5, %v2178_v32  ;;  %v2063_v39 = vpop.f32.mrb[154].mxu0 }
 0x519   :  { %2984 = vtanh.f32 %v2147_v62  ;;  %v2148_v3 = vmul.f32 0.5, %v2063_v39  ;;  %v2065_v49 = vpop.f32.mrb[155].mxu0 }
 0x51a   :  { %v2244_v22 = vpack.c.bf16 %v2195_v61, %v2194_v35 }
 0x51b   :  { %v2981_v34 = vpop.eup %2980  ;;  %2986 = vtanh.f32 %v2148_v3 }
 0x51c   :  { %v2179_v10 = vadd.f32 1.0, %v2981_v34  ;;  %2287 = vmatpush1.bf16.msra.mxu1 %v2244_v22 }
 0x51d   :  { %v2983_v5 = vpop.eup %2982  ;;  %2288 = vmatprep.subr.bf16.mxu1 %v3014_v1 }
 0x51e   :  { %v2180_v63 = vadd.f32 1.0, %v2983_v5  ;;  %v2068_v7 = vpop.f32.mrb[156].mxu0  ;;  %v2196_v9 = vmul.f32 0.5, %v2179_v10 }
 0x51f   :  { %v2070_v38 = vpop.f32.mrb[157].mxu0  ;;  %v2217_v41 = vmax.f32 %v2068_v7, 0.0 }
 0x520   :  { %v2197_v37 = vmul.f32 0.5, %v2180_v63  ;;  %v2071_v31 = vpop.f32.mrb[158].mxu0 }
 0x521   :  { %v2218_v13 = vmax.f32 %v2071_v31, 0.0  ;;  %v2073_v15 = vpop.f32.mrb[159].mxu0 }
 0x522   :  { %v2245_v4 = vpack.c.bf16 %v2197_v37, %v2196_v9 }
 0x523   :  { %v2985_v2 = vpop.eup %2984  ;;  %v2247_v21 = vpack.c.bf16 %v2218_v13, %v2217_v41 }
 0x524   :  { %v2181_v6 = vadd.f32 1.0, %v2985_v2  ;;  %2289 = vmatpush1.bf16.msra.mxu1 %v2245_v4 }
 0x525   :  { %v2987_v43 = vpop.eup %2986  ;;  %2290 = vmatprep.subr.bf16.mxu1 %v3014_v1 }
 0x526   :  { %v2182_v30 = vadd.f32 1.0, %v2987_v43  ;;  %v2076_v12 = vpop.f32.mrb[160].mxu0  ;;  %v2198_v36 = vmul.f32 0.5, %v2181_v6 }
 0x527   :  { %v2078_v33 = vpop.f32.mrb[161].mxu0  ;;  %v2219_v45 = vmax.f32 %v2076_v12, 0.0 }
 0x528   :  { %v2199_v14 = vmul.f32 0.5, %v2182_v30  ;;  %v2079_v44 = vpop.f32.mrb[162].mxu0 }
 0x529   :  { %v2220_v18 = vmax.f32 %v2079_v44, 0.0  ;;  %v2081_v17 = vpop.f32.mrb[163].mxu0 }
 0x52a   :  { %v2246_v52 = vpack.c.bf16 %v2199_v14, %v2198_v36 }
 0x52b   :  { %v2248_v47 = vpack.c.bf16 %v2220_v18, %v2219_v45 }
 0x52c   :  { %2291 = vmatpush1.bf16.msra.mxu1 %v2246_v52 }
 0x52d   :  { %2292 = vmatprep.subr.bf16.mxu1 %v3014_v1 }
 0x52e   :  { %v2084_v16 = vpop.f32.mrb[164].mxu0 }
 0x52f   :  { %v2086_v48 = vpop.f32.mrb[165].mxu0  ;;  %v2221_v20 = vmax.f32 %v2084_v16, 0.0 }
 0x530   :  { %2293 = vmatpush1.bf16.msra.mxu1 %v2247_v21  ;;  %v2087_v25 = vpop.f32.mrb[166].mxu0 }
 0x531   :  { %2294 = vmatprep.subr.bf16.mxu1 %v3014_v1  ;;  %v2222_v50 = vmax.f32 %v2087_v25, 0.0  ;;  %v2089_v24 = vpop.f32.mrb[167].mxu0 }
 0x533   :  { %v2249_v55 = vpack.c.bf16 %v2222_v50, %v2221_v20 }
 0x534   :  { %2295 = vmatpush1.bf16.msra.mxu1 %v2248_v47 }
 0x535   :  { %2296 = vmatprep.subr.bf16.mxu1 %v3014_v1 }
 0x536   :  { %v2092_v51 = vpop.f32.mrb[168].mxu0 }
 0x537   :  { %v2094_v23 = vpop.f32.mrb[169].mxu0  ;;  %v2223_v53 = vmax.f32 %v2092_v51, 0.0 }
 0x538   :  { %2297 = vmatpush1.bf16.msra.mxu1 %v2249_v55  ;;  %v2095_v27 = vpop.f32.mrb[170].mxu0 }
 0x539   :  { %v2224_v28 = vmax.f32 %v2095_v27, 0.0  ;;  %v2097_v57 = vpop.f32.mrb[171].mxu0  ;;  %2298 = vmatprep.subr.bf16.mxu1 %v3014_v1 }
 0x53b   :  { %v2250_v54 = vpack.c.bf16 %v2224_v28, %v2223_v53 }
 0x53d   :  { %2299 = vmatpush1.bf16.msra.mxu1 %v2250_v54 }
 0x53e   :  { %v2100_v8 = vpop.f32.mrb[172].mxu0  ;;  %2300 = vmatprep.subr.bf16.mxu1 %v3014_v1 }
 0x53f   :  { %v2225_v26 = vmax.f32 %v2100_v8, 0.0  ;;  %v2102_v56 = vpop.f32.mrb[173].mxu0 }
 0x540   :  { %v2103_v58 = vpop.f32.mrb[174].mxu0 }
 0x541   :  { %v2251_v46 = vpack.c.bf16 %v2225_v26, %v2225_v26  ;;  %v2104_v29 = vpop.f32.mrb[175].mxu0 }
 0x543   :  { %v2282_v60 = vsel %vm1455_vm2, %v2251_v46, 0 }
 0x544   :  { %2301 = vmatpush1.bf16.msra.mxu1 %v2282_v60 }
 0x547   :  { %2317 = vmatmul.mubr.bf16.vlgmr.msra.gmra.mrb[76].mxu1 %v2268_v42 }
 0x61a   :  { %v2318_v59 = vpop.f32.mrb[76].mxu1 }
 0x61b   :  { %v2324_v32 = vmul.f32 0.5, %v2318_v59  ;;  %v2320_v11 = vpop.f32.mrb[77].mxu1 }
 0x61c   :  { %v2321_v62 = vpop.f32.mrb[78].mxu1 }
 0x61d   :  { %2988 = vtanh.f32 %v2324_v32  ;;  %v2322_v0 = vpop.f32.mrb[79].mxu1 }
 0x627   :  { %v2989_v35 = vpop.eup %2988 }
 0x628   :  { %v2326_v1 = vadd.f32 1.0, %v2989_v35 }
 0x62a   :  { %v2327_v61 = vmul.f32 0.5, %v2326_v1 }
 0x62c   :  { %2328 = vst [vmem:[#allocation2] sm:$0x1] %v2327_v61 }
 0x62d   :  { %3001 = shalt.err (!%p2998_p4)
}
 0x62e   :  { %s3002_s23 = scalar_lea.hbm %s3859_s5, 16 }
 0x62f   :  { %p3003_p5 = scmp.ne.s32.totalorder %s3859_s5, %s3002_s23  ;;  %p3006_p6 = scmp.lt.u32.totalorder %s3002_s23, %s3859_s5 }
 0x631   :  { %p3008_p7 = pnand %p3006_p6, %p3003_p5 }
 0x633   :  { %3011 = shalt.err (!%p3008_p7)
}
 0x634   :  { %2338 = dma.vmem_to_hbm [thread:$0]  %s2336_s4, 16, %s3859_s5, [#allocation3]  }
 0x635   :  { %3012 = dma.done.wait [#allocation3], 16  }
 0x636   :  { %3013 = vsyncadd [#allocation3], 4294967280 }
 0x637   :  { %2342 = vsyncpa [#allocation3], 1 }

</bundles_post_ra>
